<compile_context>
chip_gen: v6e
topology: v6e:2x2x1
jax: 0.10.0
libtpu: 0.0.40
codegen_flags: <defaults>
</compile_context>

<pallas_src>
import functools

import jax
import jax.numpy as jnp
from jax.experimental import pallas as pl
from jax.experimental.pallas import tpu as pltpu  # noqa: F401  (kept for TPU-specific tuning hooks)

EPS = 1e-6


# --------------------------------------------------------------------------- training kernel
def _veuler_train_kernel(x_ref, mask_ref, nz_ref, np_ref,
                         ws_ref, bs_ref, wd_ref, bd_ref,
                         packed_ref, kld_ref, *, n_steps, n_nodes, hidden):
    T, N, H = n_steps, n_nodes, hidden
    S = T - 1

    # static head (masked linear encoder), fused mu|logstd: (T*N, F) x (F, 2H)
    x = (x_ref[...] * mask_ref[...]).astype(jnp.bfloat16)
    s_out = jnp.dot(x, ws_ref[...], preferred_element_type=jnp.float32) + bs_ref[...]
    mu = s_out[:, :H]
    logstd = s_out[:, H:]
    zs = mu + nz_ref[...] * jnp.exp(logstd)                                   # reparam

    # dynamic head, fused p_mu|p_logstd: (T*N, H) x (H, 2H)
    d_out = jnp.dot(zs.astype(jnp.bfloat16), wd_ref[...],
                    preferred_element_type=jnp.float32) + bd_ref[...]
    p_mu = d_out[:, :H]
    p_logstd = d_out[:, H:]
    preds = p_mu + np_ref[...] * jnp.exp(p_logstd)                            # reparam

    # lane-dense packed output (T*N, 6H)
    packed_ref[...] = jnp.concatenate([mu, logstd, zs, p_mu, p_logstd, preds], axis=-1)

    # KLD(mu[1:], logstd[1:], p_mu[:-1], p_logstd[:-1]) with the exact PyTorch
    # semantics (per-step std_1/std_2, ALL-step (mu-p_mu)^2 broadcast), factored
    # so the full-tensor diff term is reduced once instead of S times.
    std1 = jnp.exp(logstd[N:, :]) + EPS            # (S*N, H)  <- logstd[1:]
    std2 = jnp.exp(p_logstd[:S * N, :]) + EPS      # (S*N, H)  <- p_logstd[:-1]
    inv_var2 = 1.0 / (std2 * std2)
    a = 2.0 * jnp.log(std2) - 2.0 * jnp.log(std1) - 1.0 + (std1 * std1) * inv_var2
    diff2 = (mu[N:, :] - p_mu[:S * N, :]) ** 2     # (S*N, H)

    d_mean = jnp.mean(diff2.reshape(S, N, H), axis=0)       # (N, H) = mean_s (mu-p_mu)^2
    c_sum = jnp.sum(inv_var2.reshape(S, N, H), axis=0)      # (N, H) = sum_i 1/std2_i^2
    total = jnp.sum(a, keepdims=True) + jnp.sum(d_mean * c_sum, keepdims=True)   # (1, 1)
    kld_ref[...] = 0.5 * total / (N * S * H)


# --------------------------------------------------------------------------- eval kernel
def _veuler_eval_kernel(x_ref, mask_ref, nz_ref, ws_ref, bs_ref, wdmu_ref, bdmu_ref,
                        packed_ref, *, hidden):
    H = hidden
    x = (x_ref[...] * mask_ref[...]).astype(jnp.bfloat16)
    s_out = jnp.dot(x, ws_ref[...], preferred_element_type=jnp.float32) + bs_ref[...]
    mu = s_out[:, :H]
    logstd = s_out[:, H:]
    zs = mu + nz_ref[...] * jnp.exp(logstd)                                   # reparam (as in PyTorch eval)
    p_mu = jnp.dot(zs.astype(jnp.bfloat16), wdmu_ref[...],
                   preferred_element_type=jnp.float32) + bdmu_ref[...]
    packed_ref[...] = jnp.concatenate([mu, p_mu], axis=-1)                    # (T*N, 2H)


# --------------------------------------------------------------------------- wrapper
def veuler_forward(data, mask, params, noise_z, noise_p, training=True):
    T, N, F = data.shape
    H = params["ws_mu"].shape[1]

    x2 = data.reshape(T * N, F)
    m2 = mask.reshape(T * N, 1)
    nz2 = noise_z.reshape(T * N, H)

    # fused static head weights (F, 2H); bf16 feed for the MXU, f32 bias/accum
    w_s = jnp.concatenate([params["ws_mu"], params["ws_ls"]], axis=1).astype(jnp.bfloat16)
    b_s = jnp.concatenate([params["bs_mu"], params["bs_ls"]], axis=1)

    if training:
        np2 = noise_p.reshape(T * N, H)
        w_d = jnp.concatenate([params["wd_mu"], params["wd_ls"]], axis=1).astype(jnp.bfloat16)
        b_d = jnp.concatenate([params["bd_mu"], params["bd_ls"]], axis=1)
        kernel = functools.partial(_veuler_train_kernel, n_steps=T, n_nodes=N, hidden=H)
        packed, kld = pl.pallas_call(
            kernel,
            out_shape=(jax.ShapeDtypeStruct((T * N, 6 * H), jnp.float32),
                       jax.ShapeDtypeStruct((1, 1), jnp.float32)),
        )(x2, m2, nz2, np2, w_s, b_s, w_d, b_d)
        p3 = packed.reshape(T, N, 6 * H)
        zs = p3[..., 2 * H:3 * H]
        preds = p3[..., 5 * H:6 * H]
        return zs, preds, kld[0, 0]                 # PyTorch: return (zs, preds); self.kld stored
    else:
        w_dmu = params["wd_mu"].astype(jnp.bfloat16)
        kernel = functools.partial(_veuler_eval_kernel, hidden=H)
        packed = pl.pallas_call(
            kernel,
            out_shape=jax.ShapeDtypeStruct((T * N, 2 * H), jnp.float32),
        )(x2, m2, nz2, w_s, b_s, w_dmu, params["bd_mu"])
        p3 = packed.reshape(T, N, 2 * H)
        return p3[..., :H], p3[..., H:], None       # PyTorch eval: return (mu, p_mu)


# --------------------------------------------------------------------------- pure-JAX reference
def _ref_forward(data, mask, params, noise_z, noise_p):
    T, N, F = data.shape
    H = params["ws_mu"].shape[1]
    x = ((data * mask).reshape(T * N, F)).astype(jnp.bfloat16)
    ws = jnp.concatenate([params["ws_mu"], params["ws_ls"]], 1).astype(jnp.bfloat16)
    bs = jnp.concatenate([params["bs_mu"], params["bs_ls"]], 1)
    s_out = jnp.dot(x, ws, preferred_element_type=jnp.float32) + bs
    mu, logstd = s_out[:, :H], s_out[:, H:]
    zs = mu + noise_z.reshape(T * N, H) * jnp.exp(logstd)
    wd = jnp.concatenate([params["wd_mu"], params["wd_ls"]], 1).astype(jnp.bfloat16)
    bd = jnp.concatenate([params["bd_mu"], params["bd_ls"]], 1)
    d_out = jnp.dot(zs.astype(jnp.bfloat16), wd, preferred_element_type=jnp.float32) + bd
    p_mu, p_logstd = d_out[:, :H], d_out[:, H:]
    preds = p_mu + noise_p.reshape(T * N, H) * jnp.exp(p_logstd)
    rs = lambda a: a.reshape(T, N, H)
    return rs(mu), rs(logstd), rs(zs), rs(p_mu), rs(p_logstd), rs(preds)


def _ref_kld(mu, logstd, p_mu, p_logstd, eps=EPS):
    # literal transcription of VEulerModel.kld_loss (including the full-tensor broadcast)
    S, N, H = mu.shape
    diff2 = (mu - p_mu) ** 2

    def per_i(ls_i, pls_i):
        s1 = jnp.exp(ls_i) + eps
        s2 = jnp.exp(pls_i) + eps
        kel = 2 * jnp.log(s2) - 2 * jnp.log(s1) - 1.0 + (s1 ** 2 + diff2) / (s2 ** 2)
        return 0.5 / N * jnp.mean(jnp.sum(kel, axis=1), axis=0)

    klds = jax.vmap(per_i)(logstd, p_logstd)        # (S, H)
    return jnp.mean(klds)


# --------------------------------------------------------------------------- main
if __name__ == "__main__":
    # TODO(synk): `static`/`dynamic` are abstract submodules in the PyTorch ctor;
    #             synthesized here as masked-linear variational heads.
    T, N, F, H = 8, 16, 32, 32          # seq, nodes, features, latent dim

    key = jax.random.PRNGKey(0)
    ks = jax.random.split(key, 12)
    data = jax.random.normal(ks[0], (T, N, F), dtype=jnp.float32)
    mask = (jax.random.uniform(ks[1], (T, N, 1)) > 0.2).astype(jnp.float32)

    params = {
        "ws_mu": 0.1 * jax.random.normal(ks[2], (F, H), dtype=jnp.float32),
        "bs_mu": 0.01 * jax.random.normal(ks[3], (1, H), dtype=jnp.float32),
        "ws_ls": 0.1 * jax.random.normal(ks[4], (F, H), dtype=jnp.float32),
        "bs_ls": 0.01 * jax.random.normal(ks[5], (1, H), dtype=jnp.float32) - 1.0,
        "wd_mu": 0.1 * jax.random.normal(ks[6], (H, H), dtype=jnp.float32),
        "bd_mu": 0.01 * jax.random.normal(ks[7], (1, H), dtype=jnp.float32),
        "wd_ls": 0.1 * jax.random.normal(ks[8], (H, H), dtype=jnp.float32),
        "bd_ls": 0.01 * jax.random.normal(ks[9], (1, H), dtype=jnp.float32) - 1.0,
    }
    noise_z = jax.random.normal(ks[10], (T, N, H), dtype=jnp.float32)   # randn_like(logstd)
    noise_p = jax.random.normal(ks[11], (T, N, H), dtype=jnp.float32)   # randn_like(p_logstd)

    # training path
    zs, preds, kld = veuler_forward(data, mask, params, noise_z, noise_p, training=True)
    jax.block_until_ready((zs, preds, kld))

    # eval path
    mu_e, p_mu_e, _ = veuler_forward(data, mask, params, noise_z, noise_p, training=False)
    jax.block_until_ready((mu_e, p_mu_e))

    # reference check (same bf16 weight casts, literal PyTorch-style KLD loop)
    mu_r, ls_r, zs_r, pmu_r, pls_r, preds_r = _ref_forward(data, mask, params, noise_z, noise_p)
    kld_r = _ref_kld(mu_r[1:], ls_r[1:], pmu_r[:-1], pls_r[:-1])

    assert zs.shape == (T, N, H) and preds.shape == (T, N, H) and kld.shape == ()
    assert bool(jnp.isfinite(kld))
    assert jnp.allclose(zs, zs_r, atol=1e-2, rtol=1e-2)
    assert jnp.allclose(preds, preds_r, atol=1e-2, rtol=1e-2)
    assert jnp.allclose(mu_e, mu_r, atol=1e-2, rtol=1e-2)
    assert jnp.allclose(p_mu_e, pmu_r, atol=1e-2, rtol=1e-2)
    assert jnp.allclose(kld, kld_r, atol=1e-2, rtol=1e-2)
    print("KERNEL_OK")
</pallas_src>

<mosaic_0001>
module attributes {stable_mosaic.version = 11 : i64} {
  func.func @_veuler_train_kernel(%arg0: memref<128x32xf32, #tpu.memory_space<vmem>>, %arg1: memref<128x1xf32, #tpu.memory_space<vmem>>, %arg2: memref<128x32xf32, #tpu.memory_space<vmem>>, %arg3: memref<128x32xf32, #tpu.memory_space<vmem>>, %arg4: memref<32x64xbf16, #tpu.memory_space<vmem>>, %arg5: memref<1x64xf32, #tpu.memory_space<vmem>>, %arg6: memref<32x64xbf16, #tpu.memory_space<vmem>>, %arg7: memref<1x64xf32, #tpu.memory_space<vmem>>, %arg8: memref<128x192xf32, #tpu.memory_space<vmem>>, %arg9: memref<1x1xf32, #tpu.memory_space<vmem>>) attributes {dimension_semantics = [], scalar_prefetch = 0 : i64, scratch_operands = 0 : i64, tpu.core_type = #tpu.core_type<tc>} {
    %c0 = arith.constant 0 : index
    %c0_0 = arith.constant 0 : index
    %0 = vector.load %arg0[%c0, %c0_0] : memref<128x32xf32, #tpu.memory_space<vmem>>, vector<128x32xf32>
    %c0_1 = arith.constant 0 : index
    %c0_2 = arith.constant 0 : index
    %1 = vector.load %arg1[%c0_1, %c0_2] : memref<128x1xf32, #tpu.memory_space<vmem>>, vector<128x1xf32>
    %2 = vector.broadcast %1 : vector<128x1xf32> to vector<128x32xf32>
    %3 = arith.mulf %0, %2 : vector<128x32xf32>
    %4 = arith.truncf %3 : vector<128x32xf32> to vector<128x32xbf16>
    %c0_3 = arith.constant 0 : index
    %c0_4 = arith.constant 0 : index
    %5 = vector.load %arg4[%c0_3, %c0_4] : memref<32x64xbf16, #tpu.memory_space<vmem>>, vector<32x64xbf16>
    %cst = arith.constant dense<0.000000e+00> : vector<128x64xf32>
    %6 = tpu.matmul %4, %5, %cst {dimension_numbers = #tpu.dot_dimension_numbers<[1], [0], [0], [1], [0, 0, 1, 1], [], []>} : vector<128x32xbf16>, vector<32x64xbf16>, vector<128x64xf32> -> vector<128x64xf32>
    %c0_5 = arith.constant 0 : index
    %c0_6 = arith.constant 0 : index
    %7 = vector.load %arg5[%c0_5, %c0_6] : memref<1x64xf32, #tpu.memory_space<vmem>>, vector<1x64xf32>
    %8 = vector.broadcast %7 : vector<1x64xf32> to vector<128x64xf32>
    %9 = arith.addf %6, %8 : vector<128x64xf32>
    %10 = vector.extract_strided_slice %9 {offsets = [0, 0], sizes = [128, 32], strides = [1, 1]} : vector<128x64xf32> to vector<128x32xf32>
    %11 = vector.extract_strided_slice %9 {offsets = [0, 32], sizes = [128, 32], strides = [1, 1]} : vector<128x64xf32> to vector<128x32xf32>
    %c0_7 = arith.constant 0 : index
    %c0_8 = arith.constant 0 : index
    %12 = vector.load %arg2[%c0_7, %c0_8] : memref<128x32xf32, #tpu.memory_space<vmem>>, vector<128x32xf32>
    %13 = math.exp %11 : vector<128x32xf32>
    %14 = arith.mulf %12, %13 : vector<128x32xf32>
    %15 = arith.addf %10, %14 : vector<128x32xf32>
    %16 = arith.truncf %15 : vector<128x32xf32> to vector<128x32xbf16>
    %c0_9 = arith.constant 0 : index
    %c0_10 = arith.constant 0 : index
    %17 = vector.load %arg6[%c0_9, %c0_10] : memref<32x64xbf16, #tpu.memory_space<vmem>>, vector<32x64xbf16>
    %cst_11 = arith.constant dense<0.000000e+00> : vector<128x64xf32>
    %18 = tpu.matmul %16, %17, %cst_11 {dimension_numbers = #tpu.dot_dimension_numbers<[1], [0], [0], [1], [0, 0, 1, 1], [], []>} : vector<128x32xbf16>, vector<32x64xbf16>, vector<128x64xf32> -> vector<128x64xf32>
    %c0_12 = arith.constant 0 : index
    %c0_13 = arith.constant 0 : index
    %19 = vector.load %arg7[%c0_12, %c0_13] : memref<1x64xf32, #tpu.memory_space<vmem>>, vector<1x64xf32>
    %20 = vector.broadcast %19 : vector<1x64xf32> to vector<128x64xf32>
    %21 = arith.addf %18, %20 : vector<128x64xf32>
    %22 = vector.extract_strided_slice %21 {offsets = [0, 0], sizes = [128, 32], strides = [1, 1]} : vector<128x64xf32> to vector<128x32xf32>
    %23 = vector.extract_strided_slice %21 {offsets = [0, 32], sizes = [128, 32], strides = [1, 1]} : vector<128x64xf32> to vector<128x32xf32>
    %c0_14 = arith.constant 0 : index
    %c0_15 = arith.constant 0 : index
    %24 = vector.load %arg3[%c0_14, %c0_15] : memref<128x32xf32, #tpu.memory_space<vmem>>, vector<128x32xf32>
    %25 = math.exp %23 : vector<128x32xf32>
    %26 = arith.mulf %24, %25 : vector<128x32xf32>
    %27 = arith.addf %22, %26 : vector<128x32xf32>
    %28 = tpu.concatenate %10, %11, %15, %22, %23, %27 in 1 : vector<128x32xf32>, vector<128x32xf32>, vector<128x32xf32>, vector<128x32xf32>, vector<128x32xf32>, vector<128x32xf32> -> vector<128x192xf32>
    %c0_16 = arith.constant 0 : index
    %c0_17 = arith.constant 0 : index
    %29 = vector.load %arg8[%c0_16, %c0_17] : memref<128x192xf32, #tpu.memory_space<vmem>>, vector<128x192xf32>
    tpu.vector_store %arg8[%c0_16, %c0_17], %28 {strides = array<i32>} : memref<128x192xf32, #tpu.memory_space<vmem>>, vector<128x192xf32>,
    %30 = vector.extract_strided_slice %11 {offsets = [16, 0], sizes = [112, 32], strides = [1, 1]} : vector<128x32xf32> to vector<112x32xf32>
    %31 = math.exp %30 : vector<112x32xf32>
    %cst_18 = arith.constant 9.99999997E-7 : f32
    %32 = vector.broadcast %cst_18 : f32 to vector<112x32xf32>
    %33 = arith.addf %31, %32 : vector<112x32xf32>
    %34 = vector.extract_strided_slice %23 {offsets = [0, 0], sizes = [112, 32], strides = [1, 1]} : vector<128x32xf32> to vector<112x32xf32>
    %35 = math.exp %34 : vector<112x32xf32>
    %cst_19 = arith.constant 9.99999997E-7 : f32
    %36 = vector.broadcast %cst_19 : f32 to vector<112x32xf32>
    %37 = arith.addf %35, %36 : vector<112x32xf32>
    %38 = arith.mulf %37, %37 : vector<112x32xf32>
    %cst_20 = arith.constant 1.000000e+00 : f32
    %39 = vector.broadcast %cst_20 : f32 to vector<112x32xf32>
    %40 = arith.divf %39, %38 : vector<112x32xf32>
    %41 = math.log %37 : vector<112x32xf32>
    %cst_21 = arith.constant 2.000000e+00 : f32
    %42 = vector.broadcast %cst_21 : f32 to vector<112x32xf32>
    %43 = arith.mulf %42, %41 : vector<112x32xf32>
    %44 = math.log %33 : vector<112x32xf32>
    %cst_22 = arith.constant 2.000000e+00 : f32
    %45 = vector.broadcast %cst_22 : f32 to vector<112x32xf32>
    %46 = arith.mulf %45, %44 : vector<112x32xf32>
    %47 = arith.subf %43, %46 : vector<112x32xf32>
    %cst_23 = arith.constant 1.000000e+00 : f32
    %48 = vector.broadcast %cst_23 : f32 to vector<112x32xf32>
    %49 = arith.subf %47, %48 : vector<112x32xf32>
    %50 = arith.mulf %33, %33 : vector<112x32xf32>
    %51 = arith.mulf %50, %40 : vector<112x32xf32>
    %52 = arith.addf %49, %51 : vector<112x32xf32>
    %53 = vector.extract_strided_slice %10 {offsets = [16, 0], sizes = [112, 32], strides = [1, 1]} : vector<128x32xf32> to vector<112x32xf32>
    %54 = vector.extract_strided_slice %22 {offsets = [0, 0], sizes = [112, 32], strides = [1, 1]} : vector<128x32xf32> to vector<112x32xf32>
    %55 = arith.subf %53, %54 : vector<112x32xf32>
    %56 = arith.mulf %55, %55 : vector<112x32xf32>
    %57 = vector.shape_cast %56 : vector<112x32xf32> to vector<7x16x32xf32>
    %cst_24 = arith.constant dense<0.000000e+00> : vector<16x32xf32>
    %58 = vector.multi_reduction <add>, %57, %cst_24 [0] : vector<7x16x32xf32> to vector<16x32xf32>
    %cst_25 = arith.constant 7.000000e+00 : f32
    %59 = vector.broadcast %cst_25 : f32 to vector<16x32xf32>
    %60 = arith.divf %58, %59 : vector<16x32xf32>
    %61 = vector.shape_cast %40 : vector<112x32xf32> to vector<7x16x32xf32>
    %cst_26 = arith.constant dense<0.000000e+00> : vector<16x32xf32>
    %62 = vector.multi_reduction <add>, %61, %cst_26 [0] : vector<7x16x32xf32> to vector<16x32xf32>
    %63 = vector.shape_cast %52 : vector<112x32xf32> to vector<1x112x32xf32>
    %cst_27 = arith.constant dense<0.000000e+00> : vector<1xf32>
    %64 = vector.multi_reduction <add>, %63, %cst_27 [1, 2] : vector<1x112x32xf32> to vector<1xf32>
    %65 = vector.shape_cast %64 : vector<1xf32> to vector<1x1x1xf32>
    %66 = vector.extract %65[0, 0, 0] : f32 from vector<1x1x1xf32>
    %67 = vector.broadcast %66 : f32 to vector<1x1xf32>
    %68 = arith.mulf %60, %62 : vector<16x32xf32>
    %69 = vector.shape_cast %68 : vector<16x32xf32> to vector<1x16x32xf32>
    %cst_28 = arith.constant dense<0.000000e+00> : vector<1xf32>
    %70 = vector.multi_reduction <add>, %69, %cst_28 [1, 2] : vector<1x16x32xf32> to vector<1xf32>
    %71 = vector.shape_cast %70 : vector<1xf32> to vector<1x1x1xf32>
    %72 = vector.extract %71[0, 0, 0] : f32 from vector<1x1x1xf32>
    %73 = vector.broadcast %72 : f32 to vector<1x1xf32>
    %74 = arith.addf %67, %73 : vector<1x1xf32>
    %cst_29 = arith.constant 5.000000e-01 : f32
    %75 = vector.broadcast %cst_29 : f32 to vector<1x1xf32>
    %76 = arith.mulf %75, %74 : vector<1x1xf32>
    %cst_30 = arith.constant 3.584000e+03 : f32
    %77 = vector.broadcast %cst_30 : f32 to vector<1x1xf32>
    %78 = arith.divf %76, %77 : vector<1x1xf32>
    %c0_31 = arith.constant 0 : index
    %c0_32 = arith.constant 0 : index
    %79 = vector.load %arg9[%c0_31, %c0_32] : memref<1x1xf32, #tpu.memory_space<vmem>>, vector<1x1xf32>
    tpu.vector_store %arg9[%c0_31, %c0_32], %78 {strides = array<i32>} : memref<1x1xf32, #tpu.memory_space<vmem>>, vector<1x1xf32>,
    return
  }
}

</mosaic_0001>

<bundles_post_ra>
// kernel: tpu_custom_call.1
= control target key start
LH: loop header
LB: loop body
LE: loop exit
PB: predicated region body
PF: predicated region fallthrough
CT: control target
= control target key end

     0   :  { %v1757_v2 = vmov 0   ;;  %s2992_s0 = inlined_call_operand.vmem [shape: f32[128,32], index: 0, kind: input, shape index: {}]   ;;  %s2993_s1 = inlined_call_operand.vmem [shape: f32[128,1], index: 1, kind: input, shape index: {}]   ;;  %s2994_s2 = inlined_call_operand.vmem [shape: f32[128,32], index: 2, kind: input, shape index: {}]   ;;  %s2995_s3 = inlined_call_operand.vmem [shape: f32[128,32], index: 3, kind: input, shape index: {}]   ;;  %s2996_s4 = inlined_call_operand.vmem [shape: bf16[32,64], index: 4, kind: input, shape index: {}]   ;;  %s2997_s5 = inlined_call_operand.vmem [shape: f32[1,64], index: 5, kind: input, shape index: {}]   ;;  %s2998_s6 = inlined_call_operand.vmem [shape: bf16[32,64], index: 6, kind: input, shape index: {}]   ;;  %s2999_s7 = inlined_call_operand.vmem [shape: f32[1,64], index: 7, kind: input, shape index: {}]   ;;  %s3000_s8 = inlined_call_operand.vmem [shape: f32[128,192], index: 8, kind: output, shape index: {0}]   ;;  %s3001_s9 = inlined_call_operand.hbm [shape: f32[1,1], index: 9, kind: output, shape index: {1}]  }
   0x1   :  { %v51_v0 = vld [vmem:[%s2993_s1 + $0x10] sm:$0xff]  ;;  %v49_v1 = vld [vmem:[%s2993_s1] sm:$0xff]  ;;  %1582 = vset.pattern.permute.xlu1 %v1757_v2  ;;  %1581 = vset.pattern.permute.xlu0 %v1757_v2  ;;  %v52_v3 = vld [vmem:[%s2993_s1 + $0x18] sm:$0xff] }
   0x2   :  { %77 = vperm.xlu1 %1582, %v51_v0   ;;  %67 = vperm.xlu0 %1581, %v49_v1   ;;  %v50_v4 = vld [vmem:[%s2993_s1 + $0x8] sm:$0xff]  ;;  %v53_v7 = vld [vmem:[%s2993_s1 + $0x20] sm:$0xff]  ;;  %v56_v9 = vld [vmem:[%s2993_s1 + $0x38] sm:$0xff] }
   0x3   :  { %v1583_v5 = vld [vmem:[%s2996_s4 + $0x8] sm:$0xff]   ;;  %v1584_v8 = vld [vmem:[%s2996_s4] sm:$0xff]   ;;  %v55_v10 = vld [vmem:[%s2993_s1 + $0x30] sm:$0xff] }
   0x4   :  { %v54_v6 = vld [vmem:[%s2993_s1 + $0x28] sm:$0xff]  ;;  %1532 = vmatprep.subr.bf16.mxu0 %v1583_v5 }
   0x5   :  { %1533 = vmatpush3.bf16.msra.mxu0 %v1583_v5 }
   0x6   :  { %82 = vperm.xlu1 %1582, %v52_v3   ;;  %72 = vperm.xlu0 %1581, %v50_v4  }
   0x7   :  { %1534 = vmatprep.subr.bf16.mxu0 %v1584_v8 }
   0xa   :  { %92 = vperm.xlu1 %1582, %v54_v6   ;;  %87 = vperm.xlu0 %1581, %v53_v7  }
   0xb   :  { %15 = vsyncpa [#allocation3], 0  ;;  %1535 = vmatpush3.bf16.msra.mxu0 %v1584_v8  ;;  %v58_v11 = vld [vmem:[%s2993_s1 + $0x48] sm:$0xff]  ;;  %v57_v12 = vld [vmem:[%s2993_s1 + $0x40] sm:$0xff]  ;;  %vm192_vm0 = vcmask 261120   ;;  %vm1309_vm1 = vcmask 523520  }
   0xc   :  { %v60_v13 = vld [vmem:[%s2993_s1 + $0x58] sm:$0xff]  ;;  %v59_v14 = vld [vmem:[%s2993_s1 + $0x50] sm:$0xff]  ;;  %v62_v15 = vld [vmem:[%s2993_s1 + $0x68] sm:$0xff]  ;;  %vm946_vm2 = vcmask 523264   ;;  %vm963_vm3 = vcmask 785408   ;;  %vm1456_vm4 = vcmask 0  }
   0xd   :  { %v61_v16 = vld [vmem:[%s2993_s1 + $0x60] sm:$0xff]  ;;  %v64_v17 = vld [vmem:[%s2993_s1 + $0x78] sm:$0xff]  ;;  %v63_v18 = vld [vmem:[%s2993_s1 + $0x70] sm:$0xff] }
   0xe   :  { %102 = vperm.xlu1 %1582, %v56_v9   ;;  %97 = vperm.xlu0 %1581, %v55_v10   ;;  %v35_v21 = vld [vmem:[%s2992_s0 + $0x10] sm:$0xff]  ;;  %v33_v22 = vld [vmem:[%s2992_s0] sm:$0xff]  ;;  %v36_v23 = vld [vmem:[%s2992_s0 + $0x18] sm:$0xff] }
   0xf   :  { %v34_v24 = vld [vmem:[%s2992_s0 + $0x8] sm:$0xff]  ;;  %v37_v32 = vld [vmem:[%s2992_s0 + $0x20] sm:$0xff]  ;;  %v40_v39 = vld [vmem:[%s2992_s0 + $0x38] sm:$0xff] }
  0x10   :  { %v38_v31 = vld [vmem:[%s2992_s0 + $0x28] sm:$0xff]  ;;  %v39_v40 = vld [vmem:[%s2992_s0 + $0x30] sm:$0xff]  ;;  %v41_v47 = vld [vmem:[%s2992_s0 + $0x40] sm:$0xff] }
  0x11   :  { %v42_v46 = vld [vmem:[%s2992_s0 + $0x48] sm:$0xff]  ;;  %v44_v53 = vld [vmem:[%s2992_s0 + $0x58] sm:$0xff]  ;;  %v43_v54 = vld [vmem:[%s2992_s0 + $0x50] sm:$0xff] }
  0x12   :  { %112 = vperm.xlu1 %1582, %v58_v11   ;;  %107 = vperm.xlu0 %1581, %v57_v12   ;;  %v46_v60 = vld [vmem:[%s2992_s0 + $0x68] sm:$0xff]  ;;  %v45_v61 = vld [vmem:[%s2992_s0 + $0x60] sm:$0xff]  ;;  %v48_v3 = vld [vmem:[%s2992_s0 + $0x78] sm:$0xff] }
  0x13   :  { %v47_v4 = vld [vmem:[%s2992_s0 + $0x70] sm:$0xff]  ;;  %v1925_v11 = vld [vmem:[%s2997_s5] ss:$0 sm:$0xff]  ;;  %s1760_s5 = smov 32   ;;  %s1761_s0 = smov [#allocation2]  }
  0x14   :  { %s1466_s11 = sshll.u32 %s1761_s0, 4  ;;  %s1467_s11 = int_to_ptr.vmem [resolvable:$true] %s1466_s11 }
  0x15   :  { %s1739_s12 = scalar_lea.vmem %s1467_s11, 32  ;;  %p1740_p1 = scmp.lt.s32.totalorder %s1467_s11, %s1467_s11 }
  0x16   :  { %122 = vperm.xlu1 %1582, %v60_v13   ;;  %117 = vperm.xlu0 %1581, %v59_v14  }
  0x1a   :  { %132 = vperm.xlu1 %1582, %v62_v15   ;;  %127 = vperm.xlu0 %1581, %v61_v16  }
  0x1e   :  { %142 = vperm.xlu1 %1582, %v64_v17   ;;  %137 = vperm.xlu0 %1581, %v63_v18  }
  0x7d   :  { %v78_v19 = vpop.permute.xlu1 %77  ;;  %v68_v20 = vpop.permute.xlu0 %67 }
  0x7e   :  { %v147_v27 = vmul.f32 %v78_v19, %v35_v21  ;;  %v145_v28 = vmul.f32 %v68_v20, %v33_v22 }
  0x81   :  { %v83_v25 = vpop.permute.xlu1 %82  ;;  %v73_v26 = vpop.permute.xlu0 %72 }
  0x82   :  { %v148_v29 = vmul.f32 %v83_v25, %v36_v23  ;;  %v146_v30 = vmul.f32 %v73_v26, %v34_v24 }
  0x84   :  { %v162_v33 = vpack.c.bf16 %v148_v29, %v147_v27  ;;  %v161_v34 = vpack.c.bf16 %v146_v30, %v145_v28  ;;  %v1585_v29 = vld [vmem:[%s2998_s6 + $0x8] sm:$0xff]  }
  0x85   :  { %v93_v35 = vpop.permute.xlu1 %92  ;;  %v88_v36 = vpop.permute.xlu0 %87  ;;  %1552 = vmatprep.subr.bf16.mxu1 %v1585_v29 }
  0x86   :  { %v150_v37 = vmul.f32 %v93_v35, %v38_v31  ;;  %v149_v38 = vmul.f32 %v88_v36, %v37_v32  ;;  %1536 = vmatprep.mubr.msk.bf16.mxu0 %vm192_vm0, %v161_v34  ;;  %1553 = vmatpush3.bf16.msra.mxu1 %v1585_v29  ;;  %v1586_v36 = vld [vmem:[%s2998_s6] sm:$0xff]   ;;  %s1758_s6 = smov 96  }
  0x87   :  { %1537 = vmatmul.mubr.msk.bf16.vlgmr.msra.gmra.mxu0 %vm192_vm0, %v162_v33  ;;  %1554 = vmatprep.subr.bf16.mxu1 %v1586_v36 }
  0x88   :  { %v163_v41 = vpack.c.bf16 %v150_v37, %v149_v38 }
  0x89   :  { %v103_v42 = vpop.permute.xlu1 %102  ;;  %v98_v43 = vpop.permute.xlu0 %97 }
  0x8a   :  { %v152_v44 = vmul.f32 %v103_v42, %v40_v39  ;;  %v151_v45 = vmul.f32 %v98_v43, %v39_v40  ;;  %1540 = vmatprep.mubr.msk.bf16.mxu0 %vm192_vm0, %v163_v41  ;;  %1555 = vmatpush3.bf16.msra.mxu1 %v1586_v36 }
  0x8c   :  { %v164_v48 = vpack.c.bf16 %v152_v44, %v151_v45 }
  0x8d   :  { %v113_v49 = vpop.permute.xlu1 %112  ;;  %v108_v50 = vpop.permute.xlu0 %107 }
  0x8e   :  { %v154_v51 = vmul.f32 %v113_v49, %v42_v46  ;;  %v153_v52 = vmul.f32 %v108_v50, %v41_v47 }
  0x8f   :  { %1541 = vmatmul.mubr.msk.bf16.gmra.mxu0 %vm192_vm0, %v164_v48 }
  0x90   :  { %v165_v55 = vpack.c.bf16 %v154_v51, %v153_v52 }
  0x91   :  { %v123_v56 = vpop.permute.xlu1 %122  ;;  %v118_v57 = vpop.permute.xlu0 %117 }
  0x92   :  { %v156_v58 = vmul.f32 %v123_v56, %v44_v53  ;;  %v155_v59 = vmul.f32 %v118_v57, %v43_v54  ;;  %1544 = vmatprep.mubr.msk.bf16.mxu0 %vm192_vm0, %v165_v55 }
  0x94   :  { %v166_v62 = vpack.c.bf16 %v156_v58, %v155_v59 }
  0x95   :  { %v133_v63 = vpop.permute.xlu1 %132  ;;  %v128_v0 = vpop.permute.xlu0 %127 }
  0x96   :  { %v158_v1 = vmul.f32 %v133_v63, %v46_v60  ;;  %v157_v2 = vmul.f32 %v128_v0, %v45_v61 }
  0x97   :  { %1545 = vmatmul.mubr.msk.bf16.gmra.mxu0 %vm192_vm0, %v166_v62 }
  0x98   :  { %v167_v5 = vpack.c.bf16 %v158_v1, %v157_v2 }
  0x99   :  { %v143_v6 = vpop.permute.xlu1 %142  ;;  %v138_v7 = vpop.permute.xlu0 %137 }
  0x9a   :  { %v160_v8 = vmul.f32 %v143_v6, %v48_v3  ;;  %v159_v9 = vmul.f32 %v138_v7, %v47_v4  ;;  %1548 = vmatprep.mubr.msk.bf16.mxu0 %vm192_vm0, %v167_v5 }
  0x9c   :  { %v168_v10 = vpack.c.bf16 %v160_v8, %v159_v9 }
  0x9f   :  { %1549 = vmatmul.mubr.msk.bf16.gmra.mxu0 %vm192_vm0, %v168_v10 }
 0x147   :  { %v1538_v12 = vpop.f32.mrf.mxu0 }
 0x148   :  { %v1928_v13 = vadd.f32 %v1538_v12, %v1925_v11 }
 0x149   :  { %v251_v14 = vpop.f32.mrf.mxu0 }
 0x14a   :  { %3068 = vst [vmem:[#allocation5_spill] sm:$0xff] %v1928_v13  ;;  %v1931_v15 = vadd.f32 %v1925_v11, %v251_v14  ;;  %v334_v18 = vmul.f32 1.442695, %v1928_v13 }
 0x14b   :  { %v1539_v16 = vpop.f32.mrf.mxu0 }
 0x14c   :  { %3069 = vst [vmem:[#allocation6_spill] sm:$0xff] %v1931_v15  ;;  %v330_v17 = vmul.f32 1.442695, %v1931_v15  ;;  %v1936_v19 = vadd.f32 %v1539_v16, %v1925_v11  ;;  %v314_v16 = vld [vmem:[%s2994_s2] sm:$0xff] }
 0x14d   :  { %v254_v20 = vpop.f32.mrf.mxu0 }
 0x14e   :  { %3070 = vst [vmem:[#allocation7_spill] sm:$0xff] %v1936_v19  ;;  %1587 = vpow2.f32 %v330_v17  ;;  %v1939_v21 = vadd.f32 %v1925_v11, %v254_v20  ;;  %v336_v24 = vmul.f32 1.442695, %v1936_v19 }
 0x14f   :  { %v1542_v22 = vpop.f32.mrf.mxu0  ;;  %1589 = vpow2.f32 %v334_v18  ;;  %v315_v18 = vld [vmem:[%s2994_s2 + $0x8] sm:$0xff] }
 0x150   :  { %3071 = vst [vmem:[#allocation8_spill] sm:$0xff] %v1939_v21  ;;  %v332_v23 = vmul.f32 1.442695, %v1939_v21  ;;  %v1944_v25 = vadd.f32 %v1542_v22, %v1925_v11 }
 0x151   :  { %v267_v26 = vpop.f32.mrf.mxu0 }
 0x152   :  { %3072 = vst [vmem:[#allocation9_spill] sm:$0xff] %v1944_v25  ;;  %1591 = vpow2.f32 %v332_v23  ;;  %v1947_v27 = vadd.f32 %v1925_v11, %v267_v26  ;;  %v342_v31 = vmul.f32 1.442695, %v1944_v25  ;;  %v316_v23 = vld [vmem:[%s2994_s2 + $0x10] sm:$0xff] }
 0x153   :  { %v1543_v28 = vpop.f32.mrf.mxu0  ;;  %1593 = vpow2.f32 %v336_v24 }
 0x154   :  { %3073 = vst [vmem:[#allocation10_spill] sm:$0xff] %v1947_v27  ;;  %v338_v30 = vmul.f32 1.442695, %v1947_v27  ;;  %v1955_v32 = vadd.f32 %v1543_v28, %v1925_v11  ;;  %v317_v28 = vld [vmem:[%s2994_s2 + $0x18] sm:$0xff] }
 0x155   :  { %v270_v33 = vpop.f32.mrf.mxu0 }
 0x156   :  { %3074 = vst [vmem:[#allocation11_spill] sm:$0xff] %v1955_v32  ;;  %1595 = vpow2.f32 %v338_v30  ;;  %v1958_v34 = vadd.f32 %v1925_v11, %v270_v33  ;;  %v344_v38 = vmul.f32 1.442695, %v1955_v32 }
 0x157   :  { %v1546_v35 = vpop.f32.mrf.mxu0  ;;  %1597 = vpow2.f32 %v342_v31 }
 0x158   :  { %3075 = vst [vmem:[#allocation12_spill] sm:$0xff] %v1958_v34  ;;  %v340_v37 = vmul.f32 1.442695, %v1958_v34  ;;  %v1966_v39 = vadd.f32 %v1546_v35, %v1925_v11  ;;  %v318_v35 = vld [vmem:[%s2994_s2 + $0x20] sm:$0xff] }
 0x159   :  { %v283_v40 = vpop.f32.mrf.mxu0 }
 0x15a   :  { %3076 = vst [vmem:[#allocation13_spill] sm:$0xff] %v1966_v39  ;;  %1599 = vpow2.f32 %v340_v37  ;;  %v1969_v41 = vadd.f32 %v1925_v11, %v283_v40  ;;  %v350_v45 = vmul.f32 1.442695, %v1966_v39  ;;  %v319_v40 = vld [vmem:[%s2994_s2 + $0x28] sm:$0xff] }
 0x15b   :  { %v1588_v42 = vpop.eup %1587  ;;  %v1547_v43 = vpop.f32.mrf.mxu0  ;;  %1601 = vpow2.f32 %v344_v38 }
 0x15c   :  { %3077 = vst [vmem:[#allocation14_spill] sm:$0xff] %v1969_v41  ;;  %v346_v44 = vmul.f32 1.442695, %v1969_v41  ;;  %378 = vrot.lane.b32.xlu0 %v1588_v42, %s1758_s6  ;;  %v1975_v46 = vadd.f32 %v1547_v43, %v1925_v11  ;;  %v1977_v48 = vpop.eup %1589 }
 0x15d   :  { %v286_v47 = vpop.f32.mrf.mxu0 }
 0x15e   :  { %3078 = vst [vmem:[#allocation15_spill] sm:$0xff] %v1975_v46  ;;  %1603 = vpow2.f32 %v346_v44  ;;  %v1980_v49 = vadd.f32 %v1925_v11, %v286_v47  ;;  %v352_v53 = vmul.f32 1.442695, %v1975_v46  ;;  %v320_v47 = vld [vmem:[%s2994_s2 + $0x30] sm:$0xff] }
 0x15f   :  { %v1592_v50 = vpop.eup %1591  ;;  %v1550_v51 = vpop.f32.mrf.mxu0  ;;  %1605 = vpow2.f32 %v350_v45 }
 0x160   :  { %3079 = vst [vmem:[#allocation16_spill] sm:$0xff] %v1980_v49  ;;  %v348_v52 = vmul.f32 1.442695, %v1980_v49  ;;  %380 = vrot.lane.b32.xlu1 %v1592_v50, %s1758_s6  ;;  %382 = vrot.lane.b32.xlu0 %v1977_v48, %s1758_s6  ;;  %v1988_v54 = vadd.f32 %v1550_v51, %v1925_v11  ;;  %v1990_v56 = vpop.eup %1593 }
 0x161   :  { %v299_v55 = vpop.f32.mrf.mxu0 }
 0x162   :  { %3080 = vst [vmem:[#allocation17_spill] sm:$0xff] %v1988_v54  ;;  %1607 = vpow2.f32 %v348_v52  ;;  %v1993_v57 = vadd.f32 %v1925_v11, %v299_v55  ;;  %v358_v61 = vmul.f32 1.442695, %v1988_v54 }
 0x163   :  { %v1995_v58 = vpop.eup %1595  ;;  %v1551_v59 = vpop.f32.mrf.mxu0  ;;  %1609 = vpow2.f32 %v352_v53  ;;  %v321_v53 = vld [vmem:[%s2994_s2 + $0x38] sm:$0xff] }
 0x164   :  { %3081 = vst [vmem:[#allocation18_spill] sm:$0xff] %v1993_v57  ;;  %v354_v60 = vmul.f32 1.442695, %v1993_v57  ;;  %384 = vrot.lane.b32.xlu1 %v1990_v56, %s1758_s6  ;;  %386 = vrot.lane.b32.xlu0 %v1995_v58, %s1758_s6  ;;  %v2003_v63 = vpop.eup %1597  ;;  %v2006_v0 = vadd.f32 %v1551_v59, %v1925_v11 }
 0x165   :  { %v302_v62 = vpop.f32.mrf.mxu0 }
 0x166   :  { %1611 = vpow2.f32 %v354_v60  ;;  %3082 = vst [vmem:[#allocation19_spill] sm:$0xff] %v2006_v0  ;;  %v2009_v1 = vadd.f32 %v1925_v11, %v302_v62  ;;  %v360_v5 = vmul.f32 1.442695, %v2006_v0  ;;  %v322_v62 = vld [vmem:[%s2994_s2 + $0x40] sm:$0xff] }
 0x167   :  { %v2011_v2 = vpop.eup %1599  ;;  %1613 = vpow2.f32 %v358_v61 }
 0x168   :  { %3083 = vst [vmem:[#allocation20_spill] sm:$0xff] %v2009_v1  ;;  %v356_v3 = vmul.f32 1.442695, %v2009_v1  ;;  %388 = vrot.lane.b32.xlu1 %v2011_v2, %s1758_s6  ;;  %390 = vrot.lane.b32.xlu0 %v2003_v63, %s1758_s6  ;;  %v2018_v4 = vpop.eup %1601 }
 0x16a   :  { %1615 = vpow2.f32 %v356_v3 }
 0x16b   :  { %v2021_v6 = vpop.eup %1603  ;;  %1617 = vpow2.f32 %v360_v5 }
 0x16c   :  { %392 = vrot.lane.b32.xlu1 %v2018_v4, %s1758_s6  ;;  %394 = vrot.lane.b32.xlu0 %v2021_v6, %s1758_s6  ;;  %v2027_v7 = vpop.eup %1605 }
 0x16f   :  { %v2029_v8 = vpop.eup %1607 }
 0x170   :  { %396 = vrot.lane.b32.xlu1 %v2029_v8, %s1758_s6  ;;  %398 = vrot.lane.b32.xlu0 %v2027_v7, %s1758_s6  ;;  %v2035_v9 = vpop.eup %1609 }
 0x173   :  { %v2037_v10 = vpop.eup %1611 }
 0x174   :  { %400 = vrot.lane.b32.xlu1 %v2035_v9, %s1758_s6  ;;  %402 = vrot.lane.b32.xlu0 %v2037_v10, %s1758_s6  ;;  %v2043_v11 = vpop.eup %1613 }
 0x177   :  { %v2045_v12 = vpop.eup %1615 }
 0x178   :  { %404 = vrot.lane.b32.xlu1 %v2045_v12, %s1758_s6  ;;  %406 = vrot.lane.b32.xlu0 %v2043_v11, %s1758_s6  ;;  %v2051_v14 = vpop.eup %1617 }
 0x17c   :  { %408 = vrot.lane.b32.xlu1 %v2051_v14, %s1758_s6 }
 0x1ce   :  { %v379_v17 = vpop.permute.xlu0 %378 }
 0x1cf   :  { %v426_v20 = vmul.f32 %v379_v17, %v314_v16  ;;  %v323_v17 = vld [vmem:[%s2994_s2 + $0x48] sm:$0xff] }
 0x1d1   :  { %v2068_v29 = vadd.f32 %v426_v20, %v1931_v15 }
 0x1d2   :  { %v381_v22 = vpop.permute.xlu1 %380  ;;  %v383_v24 = vpop.permute.xlu0 %382 }
 0x1d3   :  { %v427_v26 = vmul.f32 %v381_v22, %v315_v18  ;;  %v428_v31 = vmul.f32 %v383_v24, %v316_v23  ;;  %v324_v24 = vld [vmem:[%s2994_s2 + $0x50] sm:$0xff] }
 0x1d5   :  { %v2071_v30 = vadd.f32 %v427_v26, %v1939_v21  ;;  %v2082_v42 = vadd.f32 %v428_v31, %v1928_v13  ;;  %v2257_v21 = vadd.f32 1e-06, %v2037_v10 }
 0x1d6   :  { %v385_v33 = vpop.permute.xlu1 %384  ;;  %v387_v36 = vpop.permute.xlu0 %386 }
 0x1d7   :  { %v429_v37 = vmul.f32 %v385_v33, %v317_v28  ;;  %v458_v38 = vpack.c.bf16 %v2071_v30, %v2068_v29  ;;  %v430_v44 = vmul.f32 %v387_v36, %v318_v35  ;;  %v325_v33 = vld [vmem:[%s2994_s2 + $0x58] sm:$0xff] }
 0x1d9   :  { %v2085_v43 = vadd.f32 %v429_v37, %v1936_v19  ;;  %1556 = vmatprep.mubr.msk.bf16.mxu1 %vm192_vm0, %v458_v38  ;;  %v2097_v55 = vadd.f32 %v430_v44, %v1947_v27 }
 0x1da   :  { %v389_v45 = vpop.permute.xlu1 %388  ;;  %v391_v50 = vpop.permute.xlu0 %390 }
 0x1db   :  { %v459_v51 = vpack.c.bf16 %v2085_v43, %v2082_v42  ;;  %v431_v52 = vmul.f32 %v389_v45, %v319_v40  ;;  %v432_v60 = vmul.f32 %v391_v50, %v320_v47  ;;  %v326_v40 = vld [vmem:[%s2994_s2 + $0x60] sm:$0xff]  ;;  %v327_v50 = vld [vmem:[%s2994_s2 + $0x68] sm:$0xff] }
 0x1dd   :  { %v2100_v59 = vadd.f32 %v431_v52, %v1958_v34  ;;  %1557 = vmatmul.mubr.msk.bf16.vlgmr.msra.gmra.mxu1 %vm192_vm0, %v459_v51  ;;  %v2112_v18 = vadd.f32 %v432_v60, %v1944_v25 }
 0x1de   :  { %v393_v61 = vpop.permute.xlu1 %392  ;;  %v395_v3 = vpop.permute.xlu0 %394 }
 0x1df   :  { %v460_v5 = vpack.c.bf16 %v2100_v59, %v2097_v55  ;;  %v433_v16 = vmul.f32 %v393_v61, %v321_v53  ;;  %v434_v22 = vmul.f32 %v395_v3, %v322_v62  ;;  %v328_v61 = vld [vmem:[%s2994_s2 + $0x70] sm:$0xff] }
 0x1e1   :  { %v2115_v20 = vadd.f32 %v433_v16, %v1955_v32  ;;  %1560 = vmatprep.mubr.msk.bf16.mxu1 %vm192_vm0, %v460_v5  ;;  %v2127_v35 = vadd.f32 %v434_v22, %v1969_v41  ;;  %v329_v16 = vld [vmem:[%s2994_s2 + $0x78] sm:$0xff] }
 0x1e2   :  { %v397_v23 = vpop.permute.xlu1 %396  ;;  %v399_v26 = vpop.permute.xlu0 %398 }
 0x1e3   :  { %v461_v28 = vpack.c.bf16 %v2115_v20, %v2112_v18  ;;  %v435_v31 = vmul.f32 %v397_v23, %v323_v17  ;;  %v436_v37 = vmul.f32 %v399_v26, %v324_v24 }
 0x1e5   :  { %v2130_v36 = vadd.f32 %v435_v31, %v1980_v49  ;;  %1561 = vmatmul.mubr.msk.bf16.gmra.mxu1 %vm192_vm0, %v461_v28  ;;  %v2142_v51 = vadd.f32 %v436_v37, %v1966_v39 }
 0x1e6   :  { %v401_v38 = vpop.permute.xlu1 %400  ;;  %v403_v44 = vpop.permute.xlu0 %402 }
 0x1e7   :  { %3084 = vst [vmem:[#allocation21_spill] sm:$0xff] %v2130_v36  ;;  %v462_v45 = vpack.c.bf16 %v2130_v36, %v2127_v35  ;;  %v437_v47 = vmul.f32 %v401_v38, %v325_v33  ;;  %v438_v53 = vmul.f32 %v403_v44, %v326_v40  ;;  %v2178_v38 = vld [vmem:[%s2999_s7] ss:$0 sm:$0xff]  ;;  %v2181_v40 = vadd.f32 1e-06, %v1977_v48  ;;  %s1759_s7 = smov 64  }
 0x1e8   :  { %v2184_v44 = vadd.f32 1e-06, %v1990_v56  ;;  %v2202_v56 = vadd.f32 1e-06, %v2018_v4  ;;  %v2218_v4 = vadd.f32 1e-06, %v2027_v7 }
 0x1e9   :  { %v2145_v52 = vadd.f32 %v437_v47, %v1975_v46  ;;  %1564 = vmatprep.mubr.msk.bf16.mxu1 %vm192_vm0, %v462_v45  ;;  %v2157_v17 = vadd.f32 %v438_v53, %v1993_v57  ;;  %v2187_v47 = vadd.f32 1e-06, %v2003_v63  ;;  %1619 = vlog2.f32 %v2181_v40 }
 0x1ea   :  { %v405_v60 = vpop.permute.xlu1 %404  ;;  %v407_v62 = vpop.permute.xlu0 %406  ;;  %1621 = vlog2.f32 %v2184_v44  ;;  %v2232_v7 = vadd.f32 1e-06, %v2035_v9 }
 0x1eb   :  { %3085 = vst [vmem:[#allocation22_spill] sm:$0xff] %v2145_v52  ;;  %v463_v3 = vpack.c.bf16 %v2145_v52, %v2142_v51  ;;  %v439_v5 = vmul.f32 %v405_v60, %v327_v50  ;;  %3086 = vst [vmem:[#allocation23_spill] sm:$0xff] %v2157_v17  ;;  %v440_v23 = vmul.f32 %v407_v62, %v328_v61  ;;  %v2193_v60 = vadd.f32 1e-06, %v1995_v58 }
 0x1ec   :  { %v2205_v62 = vadd.f32 1e-06, %v2011_v2  ;;  %1623 = vlog2.f32 %v2187_v47 }
 0x1ed   :  { %v2160_v22 = vadd.f32 %v439_v5, %v2009_v1  ;;  %1565 = vmatmul.mubr.msk.bf16.gmra.mxu1 %vm192_vm0, %v463_v3  ;;  %v2166_v31 = vadd.f32 %v440_v23, %v1988_v54  ;;  %v2270_v1 = vadd.f32 1e-06, %v2045_v12 }
 0x1ee   :  { %v409_v24 = vpop.permute.xlu1 %408 }
 0x1ef   :  { %3087 = vst [vmem:[#allocation24_spill] sm:$0xff] %v2160_v22  ;;  %v464_v26 = vpack.c.bf16 %v2160_v22, %v2157_v17  ;;  %v441_v28 = vmul.f32 %v409_v24, %v329_v16  ;;  %3088 = vst [vmem:[#allocation25_spill] sm:$0xff] %v2166_v31  ;;  %v2223_v24 = vadd.f32 1e-06, %v2021_v6 }
 0x1f1   :  { %v2169_v33 = vadd.f32 %v441_v28, %v2006_v0  ;;  %1568 = vmatprep.mubr.msk.bf16.mxu1 %vm192_vm0, %v464_v26 }
 0x1f3   :  { %3089 = vst [vmem:[#allocation26_spill] sm:$0xff] %v2169_v33  ;;  %v465_v37 = vpack.c.bf16 %v2169_v33, %v2166_v31 }
 0x1f5   :  { %1569 = vmatmul.mubr.msk.bf16.gmra.mxu1 %vm192_vm0, %v465_v37 }
 0x29d   :  { %v1558_v45 = vpop.f32.mrf.mxu1 }
 0x29e   :  { %v2190_v50 = vadd.f32 %v1558_v45, %v2178_v38 }
 0x29f   :  { %v547_v53 = vpop.f32.mrf.mxu1 }
 0x2a0   :  { %3090 = vst [vmem:[#allocation27_spill] sm:$0xff] %v2190_v50  ;;  %v630_v61 = vmul.f32 1.442695, %v2190_v50  ;;  %v2198_v48 = vadd.f32 %v2178_v38, %v547_v53 }
 0x2a1   :  { %v1559_v63 = vpop.f32.mrf.mxu1 }
 0x2a2   :  { %3091 = vst [vmem:[#allocation28_spill] sm:$0xff] %v2198_v48  ;;  %1625 = vpow2.f32 %v630_v61  ;;  %v626_v58 = vmul.f32 1.442695, %v2198_v48  ;;  %v2210_v3 = vadd.f32 %v1559_v63, %v2178_v38 }
 0x2a3   :  { %v550_v5 = vpop.f32.mrf.mxu1  ;;  %1627 = vlog2.f32 %v2193_v60 }
 0x2a4   :  { %3092 = vst [vmem:[#allocation29_spill] sm:$0xff] %v2210_v3  ;;  %v2214_v16 = vadd.f32 %v2178_v38, %v550_v5  ;;  %1629 = vlog2.f32 %v2202_v56  ;;  %v632_v2 = vmul.f32 1.442695, %v2210_v3  ;;  %v2243_v5 = vadd.f32 1e-06, %v2029_v8 }
 0x2a5   :  { %v1562_v23 = vpop.f32.mrf.mxu1  ;;  %1631 = vlog2.f32 %v2205_v62 }
 0x2a6   :  { %3093 = vst [vmem:[#allocation30_spill] sm:$0xff] %v2214_v16  ;;  %1633 = vpow2.f32 %v626_v58  ;;  %v2226_v26 = vadd.f32 %v1562_v23, %v2178_v38  ;;  %v628_v28 = vmul.f32 1.442695, %v2214_v16 }
 0x2a7   :  { %1635 = vpow2.f32 %v632_v2  ;;  %v563_v37 = vpop.f32.mrf.mxu1  ;;  %v1620_v2 = vpop.eup %1619 }
 0x2a8   :  { %3094 = vst [vmem:[#allocation31_spill] sm:$0xff] %v2226_v26  ;;  %v638_v45 = vmul.f32 1.442695, %v2226_v26  ;;  %1637 = vlog2.f32 %v2218_v4  ;;  %v2235_v53 = vadd.f32 %v2178_v38, %v563_v37  ;;  %v2251_v37 = vadd.f32 1e-06, %v2043_v11 }
 0x2a9   :  { %v1563_v6 = vpop.f32.mrf.mxu1  ;;  %1639 = vlog2.f32 %v2223_v24  ;;  %v1141_v34 = vmul.f32 0.6931472, %v1620_v2 }
 0x2aa   :  { %3095 = vst [vmem:[#allocation32_spill] sm:$0xff] %v2235_v53  ;;  %1641 = vpow2.f32 %v638_v45  ;;  %v2239_v61 = vadd.f32 %v1563_v6, %v2178_v38  ;;  %v634_v63 = vmul.f32 1.442695, %v2235_v53  ;;  %v1622_v45 = vpop.eup %1621 }
 0x2ab   :  { %1643 = vpow2.f32 %v628_v28  ;;  %v566_v58 = vpop.f32.mrf.mxu1  ;;  %v2253_v6 = vpop.eup %1623  ;;  %v2335_v27 = vmul.f32 2.0, %v1141_v34 }
 0x2ac   :  { %3096 = vst [vmem:[#allocation33_spill] sm:$0xff] %v2239_v61  ;;  %v640_v9 = vmul.f32 1.442695, %v2239_v61  ;;  %v2247_v23 = vadd.f32 %v2178_v38, %v566_v58  ;;  %1645 = vlog2.f32 %v2232_v7 }
 0x2ad   :  { %1647 = vpow2.f32 %v634_v63  ;;  %v1566_v28 = vpop.f32.mrf.mxu1 }
 0x2ae   :  { %3097 = vst [vmem:[#allocation34_spill] sm:$0xff] %v2247_v23  ;;  %1649 = vpow2.f32 %v640_v9  ;;  %v636_v8 = vmul.f32 1.442695, %v2247_v23  ;;  %v2260_v58 = vadd.f32 %v1566_v28, %v2178_v38 }
 0x2af   :  { %v1626_v15 = vpop.eup %1625  ;;  %v579_v0 = vpop.f32.mrf.mxu1  ;;  %1651 = vlog2.f32 %v2243_v5 }
 0x2b0   :  { %3098 = vst [vmem:[#allocation35_spill] sm:$0xff] %v2260_v58  ;;  %v2263_v11 = vpop.eup %1627  ;;  %v2266_v63 = vadd.f32 %v2178_v38, %v579_v0  ;;  %678 = vrot.lane.b32.xlu0 %v1626_v15, %s1758_s6  ;;  %v1044_v9 = vadd.f32 1e-06, %v1626_v15  ;;  %1653 = vlog2.f32 %v2251_v37  ;;  %v646_v28 = vmul.f32 1.442695, %v2260_v58 }
 0x2b1   :  { %v2273_v10 = vpop.eup %1629  ;;  %1655 = vpow2.f32 %v636_v8  ;;  %v1567_v54 = vpop.f32.mrf.mxu1 }
 0x2b2   :  { %3099 = vst [vmem:[#allocation36_spill] sm:$0xff] %v2266_v63  ;;  %v2276_v57 = vpop.eup %1631  ;;  %v642_v46 = vmul.f32 1.442695, %v2266_v63  ;;  %v2280_v0 = vadd.f32 %v1567_v54, %v2178_v38  ;;  %1657 = vlog2.f32 %v2257_v21  ;;  %v1058_v58 = vmul.f32 %v1044_v9, %v1044_v9 }
 0x2b3   :  { %v1634_v15 = vpop.eup %1633  ;;  %1659 = vpow2.f32 %v646_v28  ;;  %v582_v12 = vpop.f32.mrf.mxu1  ;;  %v2294_v28 = vmul.f32 %v2181_v40, %v2181_v40 }
 0x2b4   :  { %3100 = vst [vmem:[#allocation37_spill] sm:$0xff] %v2280_v0  ;;  %v1636_v49 = vpop.eup %1635  ;;  %v648_v61 = vmul.f32 1.442695, %v2280_v0  ;;  %v2285_v8 = vadd.f32 %v2178_v38, %v582_v12  ;;  %674 = vrot.lane.b32.xlu0 %v1634_v15, %s1758_s6  ;;  %1661 = vlog2.f32 %v2270_v1  ;;  %v2298_v0 = vmul.f32 %v2184_v44, %v2184_v44 }
 0x2b5   :  { %v2289_v39 = vpop.eup %1637  ;;  %1663 = vpow2.f32 %v642_v46  ;;  %680 = vrot.lane.b32.xlu1 %v1636_v49, %s1758_s6  ;;  %v1570_v54 = vpop.f32.mrf.mxu1  ;;  %v2302_v12 = vmul.f32 %v2187_v47, %v2187_v47  ;;  %v1045_v26 = vadd.f32 1e-06, %v1636_v49  ;;  %v2312_v44 = vmul.f32 %v2193_v60, %v2193_v60 }
 0x2b6   :  { %3101 = vst [vmem:[#allocation38_spill] sm:$0xff] %v2285_v8  ;;  %v2304_v63 = vpop.eup %1639  ;;  %1665 = vpow2.f32 %v648_v61  ;;  %v644_v46 = vmul.f32 1.442695, %v2285_v8  ;;  %v2308_v41 = vadd.f32 %v1570_v54, %v2178_v38  ;;  %v2316_v47 = vmul.f32 %v2202_v56, %v2202_v56 }
 0x2b7   :  { %v1642_v32 = vpop.eup %1641  ;;  %v595_v40 = vpop.f32.mrf.mxu1  ;;  %1667 = vlog2.f32 %v1044_v9  ;;  %v1143_v49 = vmul.f32 0.6931472, %v1622_v45  ;;  %v2328_v56 = vmul.f32 %v2205_v62, %v2205_v62  ;;  %v1042_v2 = vadd.f32 1e-06, %v1634_v15 }
 0x2b8   :  { %3102 = vst [vmem:[#allocation39_spill] sm:$0xff] %v2308_v41  ;;  %v1644_v25 = vpop.eup %1643  ;;  %v654_v61 = vmul.f32 1.442695, %v2308_v41  ;;  %v2320_v8 = vadd.f32 %v2178_v38, %v595_v40  ;;  %686 = vrot.lane.b32.xlu0 %v1642_v32, %s1758_s6  ;;  %1669 = vrcp.f32 %v1058_v58  ;;  %v2331_v54 = vadd.f32 1e-06, %v2051_v14 }
 0x2b9   :  { %v1646_v9 = vpop.eup %1645  ;;  %1671 = vpow2.f32 %v644_v46  ;;  %676 = vrot.lane.b32.xlu1 %v1644_v25, %s1758_s6  ;;  %v2324_v60 = vpop.f32.mrf.mxu1  ;;  %v1059_v58 = vmul.f32 %v1045_v26, %v1045_v26  ;;  %v1149_v45 = vmul.f32 0.6931472, %v2253_v6  ;;  %v1043_v19 = vadd.f32 1e-06, %v1644_v25 }
 0x2ba   :  { %3103 = vst [vmem:[#allocation40_spill] sm:$0xff] %v2320_v8  ;;  %v1648_v40 = vpop.eup %1647  ;;  %1673 = vpow2.f32 %v654_v61  ;;  %v650_v41 = vmul.f32 1.442695, %v2320_v8  ;;  %v2339_v62 = vmul.f32 %v2218_v4, %v2218_v4  ;;  %v2345_v61 = vmul.f32 2.0, %v1143_v49 }
 0x2bb   :  { %v1650_v46 = vpop.eup %1649  ;;  %v598_v53 = vpop.f32.mrf.mxu1  ;;  %1675 = vlog2.f32 %v1045_v26  ;;  %v2349_v6 = vmul.f32 %v2223_v24, %v2223_v24  ;;  %v1145_v25 = vmul.f32 0.6931472, %v2263_v11  ;;  %v1056_v4 = vmul.f32 %v1042_v2, %v1042_v2 }
 0x2bc   :  { %v1652_v15 = vpop.eup %1651  ;;  %1677 = vpow2.f32 %v650_v41  ;;  %v2342_v14 = vadd.f32 %v2178_v38, %v598_v53  ;;  %682 = vrot.lane.b32.xlu0 %v1648_v40, %s1758_s6  ;;  %v1048_v26 = vadd.f32 1e-06, %v1642_v32  ;;  %v2359_v49 = vmul.f32 %v2243_v5, %v2243_v5 }
 0x2bd   :  { %v2351_v34 = vpop.eup %1653  ;;  %688 = vrot.lane.b32.xlu1 %v1650_v46, %s1758_s6  ;;  %1679 = vlog2.f32 %v2331_v54  ;;  %v2361_v24 = vmul.f32 2.0, %v1149_v45  ;;  %v1057_v13 = vmul.f32 %v1043_v19, %v1043_v19  ;;  %v1046_v23 = vadd.f32 1e-06, %v1648_v40 }
 0x2be   :  { %3104 = vst [vmem:[#allocation41_spill] sm:$0xff] %v2342_v14  ;;  %v1656_v41 = vpop.eup %1655  ;;  %v652_v53 = vmul.f32 1.442695, %v2342_v14  ;;  %1681 = vrcp.f32 %v1059_v58  ;;  %v1151_v11 = vmul.f32 0.6931472, %v2273_v10  ;;  %v2367_v14 = vmul.f32 %v2257_v21, %v2257_v21 }
 0x2bf   :  { %v1658_v8 = vpop.eup %1657  ;;  %1683 = vlog2.f32 %v1042_v2  ;;  %v1147_v32 = vmul.f32 0.6931472, %v2276_v57  ;;  %v1157_v58 = vmul.f32 0.6931472, %v2289_v39  ;;  %v1170_v2 = vmul.f32 2.0, %v1145_v25 }
 0x2c0   :  { %v1660_v3 = vpop.eup %1659  ;;  %1685 = vpow2.f32 %v652_v53  ;;  %v1062_v40 = vmul.f32 %v1048_v26, %v1048_v26  ;;  %v1047_v10 = vadd.f32 1e-06, %v1656_v41  ;;  %v1153_v57 = vmul.f32 0.6931472, %v2304_v63 }
 0x2c1   :  { %v2370_v5 = vpop.eup %1661  ;;  %684 = vrot.lane.b32.xlu1 %v1656_v41, %s1758_s6  ;;  %694 = vrot.lane.b32.xlu0 %v1660_v3, %s1758_s6  ;;  %1687 = vrcp.f32 %v1056_v4  ;;  %v1049_v53 = vadd.f32 1e-06, %v1650_v46  ;;  %v1159_v16 = vmul.f32 0.6931472, %v1646_v9  ;;  %v1155_v33 = vmul.f32 0.6931472, %v1652_v15 }
 0x2c2   :  { %v1664_v45 = vpop.eup %1663  ;;  %1689 = vlog2.f32 %v1043_v19  ;;  %v1060_v39 = vmul.f32 %v1046_v23, %v1046_v23  ;;  %v2375_v50 = vmul.f32 2.0, %v1151_v11  ;;  %v1171_v48 = vmul.f32 2.0, %v1147_v32 }
 0x2c3   :  { %v1666_v21 = vpop.eup %1665  ;;  %1691 = vrcp.f32 %v1057_v13  ;;  %v2379_v25 = vmul.f32 %v2270_v1, %v2270_v1  ;;  %v2381_v4 = vmul.f32 2.0, %v1157_v58  ;;  %v1061_v63 = vmul.f32 %v1047_v10, %v1047_v10 }
 0x2c4   :  { %v1668_v22 = vpop.eup %1667  ;;  %1693 = vlog2.f32 %v1048_v26  ;;  %v1052_v9 = vadd.f32 1e-06, %v1660_v3  ;;  %v2387_v15 = vmul.f32 2.0, %v1153_v57  ;;  %v1050_v26 = vadd.f32 1e-06, %v1664_v45 }
 0x2c5   :  { %v2383_v19 = vpop.eup %1669  ;;  %696 = vrot.lane.b32.xlu1 %v1666_v21, %s1758_s6  ;;  %690 = vrot.lane.b32.xlu0 %v1664_v45, %s1758_s6  ;;  %v1103_v13 = vmul.f32 0.6931472, %v1668_v22  ;;  %1695 = vrcp.f32 %v1062_v40  ;;  %v2389_v41 = vmul.f32 2.0, %v1159_v16  ;;  %v1063_v32 = vmul.f32 %v1049_v53, %v1049_v53 }
 0x2c6   :  { %v1672_v46 = vpop.eup %1671  ;;  %1697 = vlog2.f32 %v1049_v53  ;;  %v2391_v58 = vmul.f32 2.0, %v1155_v33  ;;  %v1161_v31 = vmul.f32 0.6931472, %v1658_v8  ;;  %v1053_v22 = vadd.f32 1e-06, %v1666_v21 }
 0x2c7   :  { %v1674_v1 = vpop.eup %1673  ;;  %v1128_v11 = vmul.f32 2.0, %v1103_v13  ;;  %1699 = vrcp.f32 %v1060_v39  ;;  %v2394_v40 = vmul.f32 0.6931472, %v2351_v34  ;;  %v1066_v57 = vmul.f32 %v1052_v9, %v1052_v9 }
 0x2c8   :  { %v1676_v52 = vpop.eup %1675  ;;  %1701 = vlog2.f32 %v1046_v23  ;;  %v1051_v33 = vadd.f32 1e-06, %v1672_v46  ;;  %v1226_v23 = vmul.f32 %v2383_v19, %v2312_v44  ;;  %v1064_v8 = vmul.f32 %v1050_v26, %v1050_v26 }
 0x2c9   :  { %v1678_v3 = vpop.eup %1677  ;;  %692 = vrot.lane.b32.xlu1 %v1672_v46, %s1758_s6  ;;  %702 = vrot.lane.b32.xlu0 %v1674_v1, %s1758_s6  ;;  %v1184_v16 = vsub.f32 %v1128_v11, %v1170_v2  ;;  %v1105_v45 = vmul.f32 0.6931472, %v1676_v52  ;;  %1703 = vrcp.f32 %v1061_v63  ;;  %v2406_v52 = vadd.f32 %v2324_v60, %v2178_v38 }
 0x2ca   :  { %v2398_v53 = vpop.eup %1679  ;;  %1705 = vlog2.f32 %v1047_v10  ;;  %v2402_v13 = vadd.f32 1e-06, %v1678_v3  ;;  %v1067_v2 = vmul.f32 %v1053_v22, %v1053_v22  ;;  %v1163_v63 = vmul.f32 0.6931472, %v2370_v5 }
 0x2cb   :  { %v1682_v21 = vpop.eup %1681  ;;  %v1500_v34 = vadd.f32 -1.0, %v1184_v16  ;;  %v1129_v39 = vmul.f32 2.0, %v1105_v45  ;;  %1707 = vrcp.f32 %v1063_v32  ;;  %v1065_v45 = vmul.f32 %v1051_v33, %v1051_v33 }
 0x2cc   :  { %v1684_v36 = vpop.eup %1683  ;;  %1709 = vlog2.f32 %v1052_v9  ;;  %v1227_v16 = vmul.f32 %v1682_v21, %v2328_v56  ;;  %v1068_v5 = vmul.f32 %v2402_v13, %v2402_v13 }
 0x2cd   :  { %v1686_v46 = vpop.eup %1685  ;;  %v1240_v1 = vadd.f32 %v1500_v34, %v1226_v23  ;;  %v1185_v44 = vsub.f32 %v1129_v39, %v1171_v48  ;;  %v1099_v10 = vmul.f32 0.6931472, %v1684_v36  ;;  %1711 = vrcp.f32 %v1066_v57 }
 0x2ce   :  { %v1688_v11 = vpop.eup %1687  ;;  %1713 = vlog2.f32 %v1053_v22  ;;  %v2410_v32 = vadd.f32 1e-06, %v1686_v46  ;;  %v2415_v36 = vmul.f32 2.0, %v1161_v31  ;;  %v2420_v34 = vmul.f32 2.0, %v1163_v63 }
 0x2cf   :  { %v1690_v17 = vpop.eup %1689  ;;  %1354 = vrot.lane.b32.xlu0 %v1240_v1, %s1758_s6  ;;  %v1501_v38 = vadd.f32 -1.0, %v1185_v44  ;;  %v1126_v60 = vmul.f32 2.0, %v1099_v10  ;;  %1715 = vrcp.f32 %v1064_v8  ;;  %v2425_v31 = vmul.f32 1.442695, %v2406_v52 }
 0x2d0   :  { %v1692_v9 = vpop.eup %1691  ;;  %v1101_v48 = vmul.f32 0.6931472, %v1690_v17  ;;  %1717 = vlog2.f32 %v1050_v26  ;;  %v1069_v56 = vmul.f32 %v2410_v32, %v2410_v32 }
 0x2d1   :  { %v1694_v22 = vpop.eup %1693  ;;  %v1241_v57 = vadd.f32 %v1501_v38, %v1227_v16  ;;  %v1182_v23 = vsub.f32 %v1126_v60, %v2335_v27  ;;  %1719 = vrcp.f32 %v1067_v2  ;;  %v1224_v27 = vmul.f32 %v1688_v11, %v2294_v28 }
 0x2d2   :  { %v2422_v39 = vpop.eup %1695  ;;  %v1127_v8 = vmul.f32 2.0, %v1101_v48  ;;  %v1111_v1 = vmul.f32 0.6931472, %v1694_v22  ;;  %1721 = vrcp.f32 %v1065_v45  ;;  %v1311_v38 = vsel %vm1309_vm1, %v2383_v19, 0.0 }
 0x2d3   :  { %v1698_v17 = vpop.eup %1697  ;;  %1356 = vrot.lane.b32.xlu1 %v1241_v57, %s1758_s6  ;;  %698 = vrot.lane.b32.xlu0 %v1678_v3, %s1758_s6  ;;  %v1498_v26 = vadd.f32 -1.0, %v1182_v23  ;;  %1723 = vrcp.f32 %v1068_v5  ;;  %v1324_v60 = vsel %vm1309_vm1, %v1682_v21, 0.0  ;;  %v1323_v19 = vsel %vm1309_vm1, %v1692_v9, 0.0 }
 0x2d4   :  { %v1700_v2 = vpop.eup %1699  ;;  %v1183_v63 = vsub.f32 %v1127_v8, %v2345_v61  ;;  %v1132_v44 = vmul.f32 2.0, %v1111_v1  ;;  %v1113_v10 = vmul.f32 0.6931472, %v1698_v17  ;;  %1725 = vrcp.f32 %v1069_v56 }
 0x2d5   :  { %v1702_v16 = vpop.eup %1701  ;;  %v1238_v45 = vadd.f32 %v1498_v26, %v1224_v27  ;;  %1727 = vlog2.f32 %v1051_v33  ;;  %v1225_v61 = vmul.f32 %v1692_v9, %v2298_v0  ;;  %v1310_v56 = vsel %vm1309_vm1, %v1688_v11, 0.0 }
 0x2d6   :  { %v1704_v48 = vpop.eup %1703  ;;  %v1499_v3 = vadd.f32 -1.0, %v1183_v63  ;;  %v1188_v22 = vsub.f32 %v1132_v44, %v2387_v15  ;;  %v1133_v28 = vmul.f32 2.0, %v1113_v10  ;;  %v1107_v5 = vmul.f32 0.6931472, %v1702_v16 }
 0x2d7   :  { %v1706_v57 = vpop.eup %1705  ;;  %700 = vrot.lane.b32.xlu1 %v1686_v46, %s1758_s6  ;;  %1350 = vrot.lane.b32.xlu0 %v1238_v45, %s1758_s6  ;;  %1729 = vlog2.f32 %v2402_v13  ;;  %v1230_v15 = vmul.f32 %v2422_v39, %v2349_v6  ;;  %v1313_v26 = vsel %vm1309_vm1, %v1700_v2, 0.0  ;;  %v1326_v0 = vsel %vm1309_vm1, %v1704_v48, 0.0 }
 0x2d8   :  { %v1708_v33 = vpop.eup %1707  ;;  %v1504_v21 = vadd.f32 -1.0, %v1188_v22  ;;  %v1189_v23 = vsub.f32 %v1133_v28, %v2391_v58  ;;  %v1130_v8 = vmul.f32 2.0, %v1107_v5  ;;  %v1239_v46 = vadd.f32 %v1499_v3, %v1225_v61 }
 0x2d9   :  { %v1710_v1 = vpop.eup %1709  ;;  %v1109_v17 = vmul.f32 0.6931472, %v1706_v57  ;;  %v1231_v6 = vmul.f32 %v1708_v33, %v2359_v49  ;;  %v1312_v10 = vadd.f32 %v1311_v38, %v1310_v56  ;;  %v1325_v16 = vadd.f32 %v1324_v60, %v1323_v19 }
 0x2da   :  { %v2446_v11 = vpop.eup %1711  ;;  %v1244_v9 = vadd.f32 %v1504_v21, %v1230_v15  ;;  %v1505_v27 = vadd.f32 -1.0, %v1189_v23  ;;  %v1186_v13 = vsub.f32 %v1130_v8, %v2361_v24  ;;  %v1119_v63 = vmul.f32 0.6931472, %v1710_v1 }
 0x2db   :  { %v1714_v44 = vpop.eup %1713  ;;  %1352 = vrot.lane.b32.xlu1 %v1239_v46, %s1758_s6  ;;  %v1131_v58 = vmul.f32 2.0, %v1109_v17  ;;  %v1228_v22 = vmul.f32 %v1700_v2, %v2302_v12  ;;  %v1314_v21 = vadd.f32 %v1313_v26, %v1312_v10  ;;  %v1327_v15 = vadd.f32 %v1326_v0, %v1325_v16 }
 0x2dc   :  { %v1716_v45 = vpop.eup %1715  ;;  %1362 = vrot.lane.b32.xlu0 %v1244_v9, %s1758_s6  ;;  %v1502_v3 = vadd.f32 -1.0, %v1186_v13  ;;  %v1136_v28 = vmul.f32 2.0, %v1119_v63  ;;  %v1121_v5 = vmul.f32 0.6931472, %v1714_v44  ;;  %v1245_v61 = vadd.f32 %v1505_v27, %v1231_v6 }
 0x2dd   :  { %v1718_v57 = vpop.eup %1717  ;;  %v1187_v24 = vsub.f32 %v1131_v58, %v2375_v50  ;;  %v1229_v12 = vmul.f32 %v1704_v48, %v2316_v47  ;;  %v1234_v2 = vmul.f32 %v2446_v11, %v2367_v14  ;;  %v1315_v50 = vsel %vm1309_vm1, %v2422_v39, 0.0 }
 0x2de   :  { %v1720_v23 = vpop.eup %1719  ;;  %v1242_v8 = vadd.f32 %v1502_v3, %v1228_v22  ;;  %v1192_v49 = vsub.f32 %v1136_v28, %v2415_v36  ;;  %v1137_v38 = vmul.f32 2.0, %v1121_v5  ;;  %v1115_v60 = vmul.f32 0.6931472, %v1718_v57 }
 0x2df   :  { %v1722_v56 = vpop.eup %1721  ;;  %1364 = vrot.lane.b32.xlu1 %v1245_v61, %s1758_s6  ;;  %v1503_v19 = vadd.f32 -1.0, %v1187_v24  ;;  %v1317_v26 = vsel %vm1309_vm1, %v1716_v45, 0.0  ;;  %v1316_v27 = vadd.f32 %v1315_v50, %v1314_v21  ;;  %v1328_v47 = vsel %vm1309_vm1, %v1708_v33, 0.0 }
 0x2e0   :  { %v1724_v1 = vpop.eup %1723  ;;  %1358 = vrot.lane.b32.xlu0 %v1242_v8, %s1758_s6  ;;  %v1508_v46 = vadd.f32 -1.0, %v1192_v49  ;;  %v1193_v36 = vsub.f32 %v1137_v38, %v2420_v34  ;;  %v1134_v17 = vmul.f32 2.0, %v1115_v60  ;;  %v1330_v14 = vsel %vm1309_vm1, %v1722_v56, 0.0 }
 0x2e1   :  { %v2464_v0 = vpop.eup %1725  ;;  %v1243_v9 = vadd.f32 %v1503_v19, %v1229_v12  ;;  %v1329_v44 = vadd.f32 %v1328_v47, %v1327_v15  ;;  %v1235_v34 = vmul.f32 %v1720_v23, %v2379_v25  ;;  %v1318_v6 = vadd.f32 %v1317_v26, %v1316_v27 }
 0x2e2   :  { %v1728_v48 = vpop.eup %1727  ;;  %v1248_v13 = vadd.f32 %v1508_v46, %v1234_v2  ;;  %v1509_v39 = vadd.f32 -1.0, %v1193_v36  ;;  %v1190_v63 = vsub.f32 %v1134_v17, %v2381_v4  ;;  %1731 = vlog2.f32 %v2410_v32 }
 0x2e3   :  { %1360 = vrot.lane.b32.xlu1 %v1243_v9, %s1758_s6  ;;  %v1117_v58 = vmul.f32 0.6931472, %v1728_v48  ;;  %v1232_v16 = vmul.f32 %v1716_v45, %v2339_v62  ;;  %v1331_v3 = vadd.f32 %v1330_v14, %v1329_v44  ;;  %v1180_v22 = vmul.f32 2.0, %v2394_v40  ;;  %v3115_v9 = vld [vmem:[#allocation34_spill] sm:$0xff] }
 0x2e4   :  { %v1730_v10 = vpop.eup %1729  ;;  %1370 = vrot.lane.b32.xlu0 %v1248_v13, %s1758_s6  ;;  %v1506_v33 = vadd.f32 -1.0, %v1190_v63  ;;  %1733 = vpow2.f32 %v2425_v31  ;;  %v1249_v4 = vadd.f32 %v1509_v39, %v1235_v34  ;;  %v1319_v25 = vsel %vm1309_vm1, %v2446_v11, 0.0 }
 0x2e5   :  { %v1135_v28 = vmul.f32 2.0, %v1117_v58  ;;  %v1123_v5 = vmul.f32 0.6931472, %v1730_v10  ;;  %v1321_v32 = vsel %vm1309_vm1, %v1724_v1, 0.0  ;;  %v1332_v61 = vsel %vm1309_vm1, %v1720_v23, 0.0  ;;  %v3116_v58 = vld [vmem:[#allocation5_spill] sm:$0xff] }
 0x2e6   :  { %v1246_v57 = vadd.f32 %v1506_v33, %v1232_v16  ;;  %v1320_v24 = vadd.f32 %v1319_v25, %v1318_v6  ;;  %v1334_v62 = vsel %vm1309_vm1, %v2464_v0, 0.0  ;;  %v1333_v45 = vadd.f32 %v1332_v61, %v1331_v3  ;;  %v3117_v33 = vld [vmem:[#allocation7_spill] sm:$0xff]  ;;  %v3118_v3 = vld [vmem:[#allocation10_spill] sm:$0xff] }
 0x2e7   :  { %1372 = vrot.lane.b32.xlu1 %v1249_v4, %s1758_s6  ;;  %v1191_v40 = vsub.f32 %v1135_v28, %v2389_v41  ;;  %v1138_v31 = vmul.f32 2.0, %v1123_v5  ;;  %v1219_v11 = vmul.f32 %v2232_v7, %v2232_v7  ;;  %v1222_v23 = vmul.f32 %v2251_v37, %v2251_v37  ;;  %v3119_v4 = vld [vmem:[#allocation32_spill] sm:$0xff]  ;;  %v3120_v28 = vld [vmem:[#allocation9_spill] sm:$0xff] }
 0x2e8   :  { %1366 = vrot.lane.b32.xlu0 %v1246_v57, %s1758_s6  ;;  %v1322_v21 = vadd.f32 %v1321_v32, %v1320_v24  ;;  %v1335_v49 = vadd.f32 %v1334_v62, %v1333_v45  ;;  %v1167_v2 = vmul.f32 0.6931472, %v2398_v53  ;;  %v1256_v5 = vsub.f32 %v3120_v28, %v3119_v4  ;;  %v3121_v32 = vld [vmem:[#allocation12_spill] sm:$0xff]  ;;  %v3122_v24 = vld [vmem:[#allocation11_spill] sm:$0xff] }
 0x2e9   :  { %v1507_v15 = vadd.f32 -1.0, %v1191_v40  ;;  %v1194_v8 = vsub.f32 %v1138_v31, %v1180_v22  ;;  %v1233_v38 = vmul.f32 %v1722_v56, %v1219_v11  ;;  %v1236_v41 = vmul.f32 %v1724_v1, %v1222_v23 }
 0x2ea   :  { %v1181_v56 = vmul.f32 2.0, %v1167_v2  ;;  %v1223_v1 = vmul.f32 %v2331_v54, %v2331_v54  ;;  %v3107_v54 = vld [vmem:[#allocation25_spill] sm:$0xff]  ;;  %v1257_v62 = vsub.f32 %v3122_v24, %v3115_v9 }
 0x2eb   :  { %1431 = vrot.lane.b32.xlu1 %v1322_v21, %s1758_s6  ;;  %v1510_v60 = vadd.f32 -1.0, %v1194_v8  ;;  %v1247_v19 = vadd.f32 %v1507_v15, %v1233_v38  ;;  %v1270_v21 = vmul.f32 %v1256_v5, %v1256_v5  ;;  %v3123_v38 = vld [vmem:[#allocation31_spill] sm:$0xff] }
 0x2ec   :  { %1433 = vrot.lane.b32.xlu0 %v1335_v49, %s1758_s6  ;;  %v1237_v26 = vmul.f32 %v2464_v0, %v1223_v1  ;;  %v1271_v49 = vmul.f32 %v1257_v62, %v1257_v62  ;;  %v3131_v62 = vld [vmem:[#allocation35_spill] sm:$0xff] }
 0x2ed   :  { %v1250_v12 = vadd.f32 %v1510_v60, %v1236_v41  ;;  %v3124_v60 = vld [vmem:[#allocation14_spill] sm:$0xff] }
 0x2ee   :  { %v1258_v41 = vsub.f32 %v3124_v60, %v3123_v38 }
 0x2ef   :  { %1368 = vrot.lane.b32.xlu1 %v1247_v19, %s1758_s6  ;;  %v1732_v50 = vpop.eup %1731  ;;  %v3125_v19 = vld [vmem:[#allocation36_spill] sm:$0xff] }
 0x2f0   :  { %1374 = vrot.lane.b32.xlu0 %v1250_v12, %s1758_s6  ;;  %v1125_v7 = vmul.f32 0.6931472, %v1732_v50  ;;  %v3126_v12 = vld [vmem:[#allocation13_spill] sm:$0xff] }
 0x2f1   :  { %v1734_v46 = vpop.eup %1733  ;;  %v1260_v2 = vsub.f32 %v3126_v12, %v3125_v19 }
 0x2f2   :  { %v1139_v37 = vmul.f32 2.0, %v1125_v7  ;;  %v3127_v7 = vld [vmem:[#allocation33_spill] sm:$0xff] }
 0x2f3   :  { %770 = vrot.lane.b32.xlu1 %v2068_v29, %s1759_s7  ;;  %v3105_v29 = vld [vmem:[#allocation23_spill] sm:$0xff] }
 0x2f4   :  { %704 = vrot.lane.b32.xlu0 %v1734_v46, %s1758_s6  ;;  %v1195_v36 = vsub.f32 %v1139_v37, %v1181_v56  ;;  %v3128_v46 = vld [vmem:[#allocation16_spill] sm:$0xff]  ;;  %v3129_v56 = vld [vmem:[#allocation38_spill] sm:$0xff] }
 0x2f5   :  { %v1259_v37 = vsub.f32 %v3128_v46, %v3127_v7 }
 0x2f6   :  { %v1511_v17 = vadd.f32 -1.0, %v1195_v36  ;;  %v3130_v36 = vld [vmem:[#allocation15_spill] sm:$0xff] }
 0x2f7   :  { %v1261_v1 = vsub.f32 %v3130_v36, %v3129_v56 }
 0x2f8   :  { %774 = vrot.lane.b32.xlu0 %v2082_v42, %s1759_s7  ;;  %v1251_v53 = vadd.f32 %v1511_v17, %v1237_v26  ;;  %v3106_v42 = vld [vmem:[#allocation21_spill] sm:$0xff]  ;;  %v1283_v26 = vsel %vm192_vm0, %v1270_v21, 0.0 }
 0x2f9   :  { %v3134_v21 = vld [vmem:[#allocation17_spill] sm:$0xff] }
 0x2fa   :  { %1376 = vrot.lane.b32.xlu1 %v1251_v53, %s1758_s6 }
 0x2fc   :  { %778 = vrot.lane.b32.xlu0 %v2097_v55, %s1759_s7  ;;  %v3108_v55 = vld [vmem:[#allocation22_spill] sm:$0xff] }
 0x2fe   :  { %772 = vrot.lane.b32.xlu1 %v2071_v30, %s1759_s7  ;;  %v3109_v30 = vld [vmem:[#allocation28_spill] sm:$0xff] }
 0x2ff   :  { %v1252_v10 = vsub.f32 %v3116_v58, %v3109_v30 }
 0x300   :  { %782 = vrot.lane.b32.xlu0 %v2112_v18, %s1759_s7  ;;  %v3111_v18 = vld [vmem:[#allocation27_spill] sm:$0xff] }
 0x301   :  { %v1254_v22 = vsub.f32 %v3118_v3, %v3111_v18  ;;  %v1266_v40 = vmul.f32 %v1252_v10, %v1252_v10  ;;  %v1274_v10 = vmul.f32 %v1260_v2, %v1260_v2  ;;  %v3137_v2 = vld [vmem:[#allocation41_spill] sm:$0xff] }
 0x302   :  { %776 = vrot.lane.b32.xlu1 %v2085_v43, %s1759_s7  ;;  %v3110_v43 = vld [vmem:[#allocation24_spill] sm:$0xff] }
 0x303   :  { %v1268_v45 = vmul.f32 %v1254_v22, %v1254_v22  ;;  %v1280_v23 = vsel %vm192_vm0, %v1266_v40, 0.0  ;;  %v1275_v22 = vmul.f32 %v1261_v1, %v1261_v1  ;;  %v3132_v40 = vld [vmem:[#allocation18_spill] sm:$0xff] }
 0x304   :  { %786 = vrot.lane.b32.xlu0 %v2127_v35, %s1759_s7 }
 0x305   :  { %v1281_v17 = vsel %vm192_vm0, %v1268_v45, 0.0  ;;  %v3133_v45 = vld [vmem:[#allocation40_spill] sm:$0xff] }
 0x306   :  { %780 = vrot.lane.b32.xlu1 %v2100_v59, %s1759_s7  ;;  %v3112_v59 = vld [vmem:[#allocation26_spill] sm:$0xff]  ;;  %v1264_v36 = vsub.f32 %v3134_v21, %v3133_v45 }
 0x308   :  { %790 = vrot.lane.b32.xlu0 %v2142_v51, %s1759_s7  ;;  %v3114_v51 = vld [vmem:[#allocation29_spill] sm:$0xff]  ;;  %v1278_v12 = vmul.f32 %v1264_v36, %v1264_v36 }
 0x309   :  { %v1255_v61 = vsub.f32 %v3121_v32, %v3114_v51 }
 0x30a   :  { %784 = vrot.lane.b32.xlu1 %v2115_v20, %s1759_s7  ;;  %v3113_v20 = vld [vmem:[#allocation30_spill] sm:$0xff] }
 0x30b   :  { %v1253_v16 = vsub.f32 %v3117_v33, %v3113_v20  ;;  %v1269_v8 = vmul.f32 %v1255_v61, %v1255_v61 }
 0x30c   :  { %794 = vrot.lane.b32.xlu0 %v3105_v29, %s1759_s7 }
 0x30d   :  { %v1267_v31 = vmul.f32 %v1253_v16, %v1253_v16  ;;  %v1273_v16 = vmul.f32 %v1259_v37, %v1259_v37  ;;  %v3138_v37 = vld [vmem:[#allocation19_spill] sm:$0xff] }
 0x30e   :  { %788 = vrot.lane.b32.xlu1 %v3106_v42, %s1759_s7  ;;  %v1282_v42 = vadd.f32 %v1281_v17, %v1280_v23  ;;  %v1265_v1 = vsub.f32 %v3138_v37, %v3137_v2 }
 0x30f   :  { %v1293_v50 = vsel %vm192_vm0, %v1267_v31, 0.0  ;;  %v1262_v31 = vsub.f32 %v3132_v40, %v3131_v62 }
 0x310   :  { %798 = vrot.lane.b32.xlu0 %v3107_v54, %s1759_s7  ;;  %v1294_v54 = vsel %vm192_vm0, %v1269_v8, 0.0  ;;  %v1284_v5 = vadd.f32 %v1283_v26, %v1282_v42 }
 0x311   :  { %v1276_v24 = vmul.f32 %v1262_v31, %v1262_v31 }
 0x312   :  { %792 = vrot.lane.b32.xlu1 %v3108_v55, %s1759_s7  ;;  %v1296_v55 = vsel %vm192_vm0, %v1271_v49, 0.0  ;;  %v3135_v49 = vld [vmem:[#allocation37_spill] sm:$0xff] }
 0x314   :  { %834 = vrot.lane.b32.xlu0 %v3109_v30, %s1758_s6 }
 0x316   :  { %796 = vrot.lane.b32.xlu1 %v3110_v43, %s1759_s7  ;;  %v1295_v43 = vadd.f32 %v1294_v54, %v1293_v50  ;;  %v3136_v50 = vld [vmem:[#allocation20_spill] sm:$0xff]  ;;  %v1287_v54 = vsel %vm192_vm0, %v1274_v10, 0.0 }
 0x318   :  { %838 = vrot.lane.b32.xlu0 %v3111_v18, %s1758_s6  ;;  %v1297_v46 = vadd.f32 %v1296_v55, %v1295_v43  ;;  %v1298_v55 = vsel %vm192_vm0, %v1273_v16, 0.0  ;;  %v1289_v16 = vsel %vm192_vm0, %v1276_v24, 0.0 }
 0x31a   :  { %800 = vrot.lane.b32.xlu1 %v3112_v59, %s1759_s7  ;;  %v1272_v59 = vmul.f32 %v1258_v41, %v1258_v41  ;;  %v1263_v41 = vsub.f32 %v3136_v50, %v3135_v49  ;;  %v1299_v50 = vadd.f32 %v1298_v55, %v1297_v46 }
 0x31c   :  { %v1285_v42 = vsel %vm192_vm0, %v1272_v59, 0.0  ;;  %v1279_v59 = vmul.f32 %v1265_v1, %v1265_v1 }
 0x31d   :  { %v1286_v21 = vadd.f32 %v1285_v42, %v1284_v5 }
 0x31e   :  { %836 = vrot.lane.b32.xlu1 %v3113_v20, %s1758_s6  ;;  %v1304_v31 = vsel %vm192_vm0, %v1279_v59, 0.0 }
 0x322   :  { %v2521_v35 = vpop.permute.xlu0 %678  ;;  %840 = vrot.lane.b32.xlu1 %v3114_v51, %s1758_s6 }
 0x326   :  { %v2525_v0 = vpop.permute.xlu0 %674  ;;  %844 = vrot.lane.b32.xlu1 %v3115_v9, %s1758_s6 }
 0x327   :  { %v2529_v27 = vpop.permute.xlu1 %680 }
 0x32a   :  { %v2531_v47 = vpop.permute.xlu0 %686 }
 0x32b   :  { %v2533_v14 = vpop.permute.xlu1 %676 }
 0x32e   :  { %v2535_v48 = vpop.permute.xlu0 %682 }
 0x32f   :  { %v2537_v13 = vpop.permute.xlu1 %688 }
 0x333   :  { %v2539_v39 = vpop.permute.xlu0 %694  ;;  %v2541_v63 = vpop.permute.xlu1 %684 }
 0x337   :  { %v2543_v44 = vpop.permute.xlu0 %690  ;;  %v2545_v34 = vpop.permute.xlu1 %696 }
 0x33b   :  { %v2547_v6 = vpop.permute.xlu0 %702  ;;  %v2557_v57 = vpop.permute.xlu1 %692 }
 0x341   :  { %v1355_v25 = vpop.permute.xlu0 %1354 }
 0x342   :  { %v1395_v40 = vsel %vm192_vm0, %v1355_v25, 0.0 }
 0x345   :  { %v1357_v15 = vpop.permute.xlu1 %1356  ;;  %v2563_v11 = vpop.permute.xlu0 %698 }
 0x346   :  { %v1397_v60 = vsel %vm192_vm0, %v1357_v15, 0.0 }
 0x349   :  { %v2577_v53 = vpop.permute.xlu1 %700  ;;  %v1351_v29 = vpop.permute.xlu0 %1350 }
 0x34a   :  { %v1392_v23 = vsel %vm192_vm0, %v1351_v29, 0.0  ;;  %v1300_v29 = vsel %vm192_vm0, %v1275_v22, 0.0  ;;  %v1291_v22 = vsel %vm192_vm0, %v1278_v12, 0.0 }
 0x34b   :  { %v1301_v25 = vadd.f32 %v1300_v29, %v1299_v50 }
 0x34d   :  { %v1353_v61 = vpop.permute.xlu1 %1352 }
 0x34e   :  { %v1393_v8 = vsel %vm192_vm0, %v1353_v61, 0.0  ;;  %v1363_v17 = vpop.permute.xlu0 %1362 }
 0x34f   :  { %v1394_v26 = vadd.f32 %v1393_v8, %v1392_v23  ;;  %v1288_v23 = vadd.f32 %v1287_v54, %v1286_v21  ;;  %v1277_v8 = vmul.f32 %v1263_v41, %v1263_v41 }
 0x351   :  { %v1396_v43 = vadd.f32 %v1395_v40, %v1394_v26  ;;  %v1365_v61 = vpop.permute.xlu1 %1364  ;;  %v1290_v46 = vadd.f32 %v1289_v16, %v1288_v23  ;;  %v1302_v15 = vsel %vm192_vm0, %v1277_v8, 0.0 }
 0x352   :  { %v1359_v37 = vpop.permute.xlu0 %1358  ;;  %v1303_v41 = vadd.f32 %v1302_v15, %v1301_v25  ;;  %v1405_v24 = vsel %vm192_vm0, %v1365_v61, 0.0 }
 0x353   :  { %v1398_v28 = vadd.f32 %v1397_v60, %v1396_v43  ;;  %v1399_v10 = vsel %vm192_vm0, %v1359_v37, 0.0  ;;  %v1403_v60 = vsel %vm192_vm0, %v1363_v17, 0.0  ;;  %v1292_v37 = vadd.f32 %v1291_v22, %v1290_v46 }
 0x354   :  { %v1305_v1 = vadd.f32 %v1304_v31, %v1303_v41 }
 0x355   :  { %v1400_v5 = vadd.f32 %v1399_v10, %v1398_v28  ;;  %v1361_v42 = vpop.permute.xlu1 %1360  ;;  %v1307_v12 = vmul.f32 0.14285715, %v1292_v37 }
 0x356   :  { %v1401_v40 = vsel %vm192_vm0, %v1361_v42, 0.0  ;;  %v1371_v36 = vpop.permute.xlu0 %1370  ;;  %v1308_v29 = vmul.f32 0.14285715, %v1305_v1 }
 0x357   :  { %v1402_v21 = vadd.f32 %v1401_v40, %v1400_v5  ;;  %v1411_v40 = vsel %vm192_vm0, %v1371_v36, 0.0 }
 0x359   :  { %v1404_v50 = vadd.f32 %v1403_v60, %v1402_v21  ;;  %v1373_v28 = vpop.permute.xlu1 %1372 }
 0x35a   :  { %v1367_v26 = vpop.permute.xlu0 %1366  ;;  %v1413_v15 = vsel %vm192_vm0, %v1373_v28, 0.0 }
 0x35b   :  { %v1406_v54 = vadd.f32 %v1405_v24, %v1404_v50  ;;  %v1407_v43 = vsel %vm192_vm0, %v1367_v26, 0.0 }
 0x35d   :  { %v1432_v55 = vpop.permute.xlu1 %1431  ;;  %v1408_v10 = vadd.f32 %v1407_v43, %v1406_v54 }
 0x35e   :  { %v1437_v23 = vmul.f32 %v1432_v55, %v1307_v12  ;;  %v1434_v8 = vpop.permute.xlu0 %1433 }
 0x35f   :  { %v1438_v59 = vmul.f32 %v1434_v8, %v1308_v29 }
 0x360   :  { %v1439_v17 = vsel %vm192_vm0, %v1437_v23, 0.0 }
 0x361   :  { %v1369_v25 = vpop.permute.xlu1 %1368  ;;  %v1440_v5 = vsel %vm192_vm0, %v1438_v59, 0.0 }
 0x362   :  { %v1409_v42 = vsel %vm192_vm0, %v1369_v25, 0.0  ;;  %v1375_v16 = vpop.permute.xlu0 %1374  ;;  %v1441_v22 = vadd.f32 %v1440_v5, %v1439_v17  ;;  %v3139_v17 = vld [vmem:[#allocation6_spill] sm:$0xff] }
 0x363   :  { %v1410_v61 = vadd.f32 %v1409_v42, %v1408_v10  ;;  %v1415_v60 = vsel %vm192_vm0, %v1375_v16, 0.0 }
 0x364   :  { %1442 = vadd.xlane.f32.xlu0 %v1441_v22  ;;  %v610_v22 = vld [vmem:[%s2995_s3] sm:$0xff] }
 0x365   :  { %v1412_v46 = vadd.f32 %v1411_v40, %v1410_v61  ;;  %v771_v41 = vpop.permute.xlu1 %770 }
 0x366   :  { %v2611_v31 = vpop.permute.xlu0 %704  ;;  %v947_v5 = vsel %vm946_vm2, %v3139_v17, %v771_v41  ;;  %v611_v41 = vld [vmem:[%s2995_s3 + $0x8] sm:$0xff]  ;;  %v3141_v17 = vld [vmem:[#allocation8_spill] sm:$0xff] }
 0x367   :  { %v1414_v21 = vadd.f32 %v1413_v15, %v1412_v46 }
 0x369   :  { %v1416_v50 = vadd.f32 %v1415_v60, %v1414_v21  ;;  %v722_v21 = vmul.f32 %v2525_v0, %v610_v22 }
 0x36a   :  { %v775_v37 = vpop.permute.xlu0 %774 }
 0x36b   :  { %v949_v40 = vsel %vm946_vm2, %v3116_v58, %v775_v37  ;;  %v612_v58 = vld [vmem:[%s2995_s3 + $0x10] sm:$0xff] }
 0x36c   :  { %v1377_v1 = vpop.permute.xlu1 %1376  ;;  %v3140_v37 = vld [vmem:[#allocation39_spill] sm:$0xff]  ;;  %v724_v0 = vmul.f32 %v2521_v35, %v612_v58 }
 0x36d   :  { %v1417_v26 = vsel %vm192_vm0, %v1377_v1, 0.0  ;;  %v723_v1 = vmul.f32 %v2533_v14, %v611_v41  ;;  %v618_v41 = vld [vmem:[%s2995_s3 + $0x40] sm:$0xff] }
 0x36e   :  { %v2615_v24 = vpop.permute.xlu0 %778  ;;  %v1418_v12 = vadd.f32 %v1417_v26, %v1416_v50  ;;  %v738_v50 = vadd.f32 %v722_v21, %v3109_v30  ;;  %v613_v26 = vld [vmem:[%s2995_s3 + $0x18] sm:$0xff]  ;;  %v740_v30 = vadd.f32 %v724_v0, %v3111_v18 }
 0x36f   :  { %v725_v14 = vmul.f32 %v2529_v27, %v613_v26  ;;  %v621_v26 = vld [vmem:[%s2995_s3 + $0x58] sm:$0xff] }
 0x370   :  { %v773_v54 = vpop.permute.xlu1 %772  ;;  %1419 = vadd.xlane.f32.xlu1 %v1418_v12  ;;  %v614_v12 = vld [vmem:[%s2995_s3 + $0x20] sm:$0xff] }
 0x371   :  { %v726_v22 = vmul.f32 %v2535_v48, %v614_v12  ;;  %v622_v12 = vld [vmem:[%s2995_s3 + $0x60] sm:$0xff] }
 0x372   :  { %v2617_v36 = vpop.permute.xlu0 %782 }
 0x373   :  { %v742_v48 = vadd.f32 %v726_v22, %v3119_v4 }
 0x374   :  { %v777_v55 = vpop.permute.xlu1 %776 }
 0x375   :  { %v950_v21 = vsel %vm946_vm2, %v3117_v33, %v777_v55  ;;  %v617_v55 = vld [vmem:[%s2995_s3 + $0x38] sm:$0xff] }
 0x376   :  { %v2619_v28 = vpop.permute.xlu0 %786 }
 0x378   :  { %v2621_v29 = vpop.permute.xlu1 %780 }
 0x379   :  { %v952_v0 = vsel %vm946_vm2, %v3121_v32, %v2621_v29  ;;  %v730_v32 = vmul.f32 %v2543_v44, %v618_v41  ;;  %v620_v29 = vld [vmem:[%s2995_s3 + $0x50] sm:$0xff] }
 0x37a   :  { %842 = vrot.lane.b32.xlu0 %v3119_v4, %s1758_s6  ;;  %v2625_v43 = vpop.permute.xlu0 %790 }
 0x37c   :  { %v2627_v23 = vpop.permute.xlu1 %784 }
 0x37e   :  { %846 = vrot.lane.b32.xlu0 %v3123_v38, %s1758_s6  ;;  %v2631_v8 = vpop.permute.xlu0 %794 }
 0x380   :  { %v2633_v59 = vpop.permute.xlu1 %788 }
 0x381   :  { %848 = vrot.lane.b32.xlu1 %v3127_v7, %s1758_s6 }
 0x382   :  { %850 = vrot.lane.b32.xlu0 %v3125_v19, %s1758_s6  ;;  %v2639_v10 = vpop.permute.xlu0 %798 }
 0x384   :  { %v2641_v25 = vpop.permute.xlu1 %792 }
 0x385   :  { %852 = vrot.lane.b32.xlu1 %v3129_v56, %s1758_s6 }
 0x386   :  { %854 = vrot.lane.b32.xlu0 %v3131_v62, %s1758_s6  ;;  %v2649_v42 = vpop.permute.xlu0 %834 }
 0x387   :  { %v964_v16 = vsel %vm963_vm3, %v947_v5, %v2649_v42  ;;  %v948_v5 = vsel %vm946_vm2, %v3141_v17, %v773_v54  ;;  %v739_v54 = vadd.f32 %v723_v1, %v3113_v20  ;;  %v741_v20 = vadd.f32 %v725_v14, %v3114_v51  ;;  %v619_v1 = vld [vmem:[%s2995_s3 + $0x48] sm:$0xff]  ;;  %v624_v17 = vld [vmem:[%s2995_s3 + $0x70] sm:$0xff] }
 0x388   :  { %996 = vst [vmem:[%s3000_s8] sm:$0xff] %v964_v16  ;;  %v2659_v61 = vpop.permute.xlu1 %796  ;;  %v731_v44 = vmul.f32 %v2557_v57, %v619_v1  ;;  %v734_v57 = vmul.f32 %v2563_v11, %v622_v12 }
 0x389   :  { %856 = vrot.lane.b32.xlu1 %v3135_v49, %s1758_s6 }
 0x38a   :  { %858 = vrot.lane.b32.xlu0 %v3133_v45, %s1758_s6  ;;  %v2667_v46 = vpop.permute.xlu0 %838 }
 0x38b   :  { %v966_v15 = vsel %vm963_vm3, %v949_v40, %v2667_v46  ;;  %v616_v40 = vld [vmem:[%s2995_s3 + $0x30] sm:$0xff] }
 0x38c   :  { %1000 = vst [vmem:[%s3000_s8 + $0x20] sm:$0xff] %v966_v15  ;;  %v2681_v60 = vpop.permute.xlu1 %800  ;;  %v615_v15 = vld [vmem:[%s2995_s3 + $0x28] sm:$0xff]  ;;  %v728_v27 = vmul.f32 %v2531_v47, %v616_v40 }
 0x38d   :  { %860 = vrot.lane.b32.xlu1 %v3137_v2, %s1758_s6  ;;  %v727_v33 = vmul.f32 %v2541_v63, %v615_v15  ;;  %v729_v63 = vmul.f32 %v2537_v13, %v617_v55  ;;  %v732_v13 = vmul.f32 %v2539_v39, %v620_v29  ;;  %v733_v39 = vmul.f32 %v2545_v34, %v621_v26 }
 0x38e   :  { %862 = vrot.lane.b32.xlu0 %v3140_v37, %s1758_s6  ;;  %v744_v47 = vadd.f32 %v728_v27, %v3123_v38  ;;  %v736_v34 = vmul.f32 %v2547_v6, %v624_v17 }
 0x38f   :  { %v743_v4 = vadd.f32 %v727_v33, %v3115_v9  ;;  %v745_v38 = vadd.f32 %v729_v63, %v3127_v7  ;;  %v746_v9 = vadd.f32 %v730_v32, %v3125_v19  ;;  %v748_v7 = vadd.f32 %v732_v13, %v3131_v62 }
 0x390   :  { %v2698_v16 = vpop.permute.xlu1 %836  ;;  %v747_v19 = vadd.f32 %v731_v44, %v3129_v56  ;;  %v749_v62 = vadd.f32 %v733_v39, %v3135_v49  ;;  %v750_v56 = vadd.f32 %v734_v57, %v3133_v45  ;;  %v951_v45 = vsel %vm946_vm2, %v3118_v3, %v2615_v24  ;;  %v3143_v24 = vld [vmem:[#allocation14_spill] sm:$0xff]  ;;  %v3149_v57 = vld [vmem:[#allocation15_spill] sm:$0xff] }
 0x391   :  { %v965_v35 = vsel %vm963_vm3, %v948_v5, %v2698_v16  ;;  %864 = vrot.lane.b32.xlu1 %v2406_v52, %s1758_s6  ;;  %v623_v5 = vld [vmem:[%s2995_s3 + $0x68] sm:$0xff]  ;;  %v955_v15 = vsel %vm946_vm2, %v3143_v24, %v2619_v28  ;;  %v3145_v28 = vld [vmem:[#allocation11_spill] sm:$0xff]  ;;  %v958_v17 = vsel %vm946_vm2, %v3149_v57, %v2641_v25 }
 0x392   :  { %898 = vrot.lane.b32.xlu0 %v738_v50, %s1760_s5  ;;  %998 = vst [vmem:[%s3000_s8 + $0x10] sm:$0xff] %v965_v35  ;;  %v735_v11 = vmul.f32 %v2577_v53, %v623_v5  ;;  %v625_v35 = vld [vmem:[%s2995_s3 + $0x78] sm:$0xff]  ;;  %s1735_s3 = scalar_lea.vmem %s1467_s11, 16 }
 0x393   :  { %v737_v49 = vmul.f32 %v2611_v31, %v625_v35  ;;  %v3142_v31 = vld [vmem:[#allocation9_spill] sm:$0xff]  ;;  %p1736_p0 = scmp.ne.s32.totalorder %s1467_s11, %s1735_s3  ;;  %p1741_p2 = scmp.lt.s32.totalorder %s1739_s12, %s1735_s3 }
 0x394   :  { %v2720_v58 = vpop.permute.xlu1 %840  ;;  %v751_v14 = vadd.f32 %v735_v11, %v3137_v2  ;;  %v3150_v11 = vld [vmem:[#allocation20_spill] sm:$0xff] }
 0x395   :  { %v967_v18 = vsel %vm963_vm3, %v950_v21, %v2720_v58  ;;  %900 = vrot.lane.b32.xlu1 %v739_v54, %s1760_s5  ;;  %v753_v6 = vadd.f32 %v737_v49, %v2406_v52  ;;  %v953_v52 = vsel %vm946_vm2, %v3142_v31, %v2617_v36  ;;  %v960_v25 = vsel %vm946_vm2, %v3150_v11, %v2659_v61  ;;  %p1742_p3 = por %p1741_p2, %p1740_p1 }
 0x396   :  { %902 = vrot.lane.b32.xlu0 %v740_v30, %s1760_s5  ;;  %1002 = vst [vmem:[%s3000_s8 + $0x30] sm:$0xff] %v967_v18  ;;  %v752_v30 = vadd.f32 %v736_v34, %v3140_v37 }
 0x397   :  { %p1743_p4 = pnand %p1742_p3, %p1736_p0 }
 0x398   :  { %v2742_v50 = vpop.permute.xlu1 %844 }
 0x399   :  { %v969_v51 = vsel %vm963_vm3, %v952_v0, %v2742_v50  ;;  %904 = vrot.lane.b32.xlu1 %v741_v20, %s1760_s5  ;;  %v954_v0 = vsel %vm946_vm2, %v3145_v28, %v2627_v23 }
 0x39a   :  { %906 = vrot.lane.b32.xlu0 %v742_v48, %s1760_s5  ;;  %1006 = vst [vmem:[%s3000_s8 + $0x50] sm:$0xff] %v969_v51  ;;  %v3144_v48 = vld [vmem:[#allocation13_spill] sm:$0xff] }
 0x39b   :  { %v957_v33 = vsel %vm946_vm2, %v3144_v48, %v2625_v43  ;;  %v3146_v43 = vld [vmem:[#allocation18_spill] sm:$0xff] }
 0x39c   :  { %v959_v23 = vsel %vm946_vm2, %v3146_v43, %v2631_v8  ;;  %v3148_v8 = vld [vmem:[#allocation17_spill] sm:$0xff] }
 0x39d   :  { %908 = vrot.lane.b32.xlu1 %v743_v4, %s1760_s5 }
 0x39e   :  { %910 = vrot.lane.b32.xlu0 %v744_v47, %s1760_s5 }
 0x3a1   :  { %912 = vrot.lane.b32.xlu1 %v745_v38, %s1760_s5  ;;  %v3147_v38 = vld [vmem:[#allocation16_spill] sm:$0xff] }
 0x3a2   :  { %914 = vrot.lane.b32.xlu0 %v746_v9, %s1760_s5  ;;  %v956_v13 = vsel %vm946_vm2, %v3147_v38, %v2633_v59  ;;  %v961_v59 = vsel %vm946_vm2, %v3148_v8, %v2639_v10 }
 0x3a5   :  { %916 = vrot.lane.b32.xlu1 %v747_v19, %s1760_s5 }
 0x3a6   :  { %918 = vrot.lane.b32.xlu0 %v748_v7, %s1760_s5 }
 0x3a9   :  { %920 = vrot.lane.b32.xlu1 %v749_v62, %s1760_s5 }
 0x3aa   :  { %922 = vrot.lane.b32.xlu0 %v750_v56, %s1760_s5 }
 0x3ad   :  { %924 = vrot.lane.b32.xlu1 %v751_v14, %s1760_s5 }
 0x3ae   :  { %926 = vrot.lane.b32.xlu0 %v752_v30, %s1760_s5 }
 0x3b1   :  { %928 = vrot.lane.b32.xlu1 %v753_v6, %s1760_s5  ;;  %v3151_v6 = vld [vmem:[#allocation19_spill] sm:$0xff] }
 0x3b2   :  { %v962_v61 = vsel %vm946_vm2, %v3151_v6, %v2681_v60 }
 0x3ed   :  { %v1443_v53 = vpop.xlane.xlu0 %1442 }
 0x3ee   :  { %v1444_v37 = vrot.slane %v1443_v53, 4 }
 0x3f0   :  { %v1445_v40 = vadd.f32 %v1444_v37, %v1443_v53 }
 0x3f1   :  { %v2806_v54 = vpop.permute.xlu0 %842 }
 0x3f2   :  { %v968_v2 = vsel %vm963_vm3, %v951_v45, %v2806_v54  ;;  %v1446_v18 = vrot.slane %v1445_v40, 2 }
 0x3f3   :  { %1004 = vst [vmem:[%s3000_s8 + $0x40] sm:$0xff] %v968_v2 }
 0x3f4   :  { %v1447_v63 = vadd.f32 %v1446_v18, %v1445_v40 }
 0x3f5   :  { %v2816_v22 = vpop.permute.xlu0 %846 }
 0x3f6   :  { %v970_v3 = vsel %vm963_vm3, %v953_v52, %v2816_v22  ;;  %v1448_v26 = vrot.slane %v1447_v63, 1 }
 0x3f7   :  { %1008 = vst [vmem:[%s3000_s8 + $0x60] sm:$0xff] %v970_v3 }
 0x3f8   :  { %v1449_v62 = vadd.f32 %v1448_v26, %v1447_v63 }
 0x3f9   :  { %v2826_v21 = vpop.permute.xlu0 %850  ;;  %v1420_v20 = vpop.xlane.xlu1 %1419 }
 0x3fa   :  { %v972_v36 = vsel %vm963_vm3, %v955_v15, %v2826_v21  ;;  %v1421_v27 = vrot.slane %v1420_v20, 4 }
 0x3fb   :  { %1012 = vst [vmem:[%s3000_s8 + $0x80] sm:$0xff] %v972_v36 }
 0x3fc   :  { %v1422_v55 = vadd.f32 %v1421_v27, %v1420_v20 }
 0x3fd   :  { %v2836_v41 = vpop.permute.xlu0 %854  ;;  %v2841_v51 = vpop.permute.xlu1 %848 }
 0x3fe   :  { %v974_v47 = vsel %vm963_vm3, %v957_v33, %v2836_v41  ;;  %v1423_v4 = vrot.slane %v1422_v55, 2  ;;  %v971_v32 = vsel %vm963_vm3, %v954_v0, %v2841_v51 }
 0x3ff   :  { %1016 = vst [vmem:[%s3000_s8 + $0xa0] sm:$0xff] %v974_v47  ;;  %1010 = vst [vmem:[%s3000_s8 + $0x70] sm:$0xff] %v971_v32 }
 0x400   :  { %v1424_v1 = vadd.f32 %v1423_v4, %v1422_v55 }
 0x401   :  { %v2856_v29 = vpop.permute.xlu0 %858  ;;  %v853_v9 = vpop.permute.xlu1 %852 }
 0x402   :  { %v976_v44 = vsel %vm963_vm3, %v959_v23, %v2856_v29  ;;  %v973_v12 = vsel %vm963_vm3, %v956_v13, %v853_v9  ;;  %v1425_v7 = vrot.slane %v1424_v1, 1 }
 0x403   :  { %1020 = vst [vmem:[%s3000_s8 + $0xc0] sm:$0xff] %v976_v44  ;;  %1014 = vst [vmem:[%s3000_s8 + $0x90] sm:$0xff] %v973_v12 }
 0x404   :  { %v1426_v39 = vadd.f32 %v1425_v7, %v1424_v1 }
 0x405   :  { %v863_v19 = vpop.permute.xlu0 %862  ;;  %v857_v5 = vpop.permute.xlu1 %856 }
 0x406   :  { %v978_v34 = vsel %vm963_vm3, %v961_v59, %v863_v19  ;;  %v975_v56 = vsel %vm963_vm3, %v958_v17, %v857_v5  ;;  %1572 = vpush %v1426_v39 }
 0x407   :  { %1024 = vst [vmem:[%s3000_s8 + $0xe0] sm:$0xff] %v978_v34  ;;  %1018 = vst [vmem:[%s3000_s8 + $0xb0] sm:$0xff] %v975_v56 }
 0x408   :  { %1574 = vpush %v1449_v62 }
 0x409   :  { %v899_v10 = vpop.permute.xlu0 %898  ;;  %v861_v35 = vpop.permute.xlu1 %860 }
 0x40a   :  { %v980_v30 = vsel %vm192_vm0, %v2649_v42, %v899_v10  ;;  %v977_v14 = vsel %vm963_vm3, %v960_v25, %v861_v35 }
 0x40b   :  { %997 = vst.msk [vmem:[%s3000_s8 + $0x8] sm:$0xff] %vm946_vm2, %v980_v30  ;;  %1022 = vst [vmem:[%s3000_s8 + $0xd0] sm:$0xff] %v977_v14 }
 0x40d   :  { %v903_v49 = vpop.permute.xlu0 %902  ;;  %v865_v53 = vpop.permute.xlu1 %864 }
 0x40e   :  { %v982_v42 = vsel %vm192_vm0, %v2667_v46, %v903_v49  ;;  %v979_v45 = vsel %vm963_vm3, %v962_v61, %v865_v53 }
 0x40f   :  { %1001 = vst.msk [vmem:[%s3000_s8 + $0x28] sm:$0xff] %vm946_vm2, %v982_v42  ;;  %1026 = vst [vmem:[%s3000_s8 + $0xf0] sm:$0xff] %v979_v45 }
 0x411   :  { %v907_v37 = vpop.permute.xlu0 %906  ;;  %v901_v2 = vpop.permute.xlu1 %900 }
 0x412   :  { %v984_v60 = vsel %vm192_vm0, %v2806_v54, %v907_v37  ;;  %v981_v31 = vsel %vm192_vm0, %v2698_v16, %v901_v2 }
 0x413   :  { %1005 = vst.msk [vmem:[%s3000_s8 + $0x48] sm:$0xff] %vm946_vm2, %v984_v60  ;;  %999 = vst.msk [vmem:[%s3000_s8 + $0x18] sm:$0xff] %vm946_vm2, %v981_v31 }
 0x415   :  { %v911_v46 = vpop.permute.xlu0 %910  ;;  %v905_v52 = vpop.permute.xlu1 %904 }
 0x416   :  { %v986_v40 = vsel %vm192_vm0, %v2816_v22, %v911_v46  ;;  %v983_v54 = vsel %vm192_vm0, %v2720_v58, %v905_v52 }
 0x417   :  { %1009 = vst.msk [vmem:[%s3000_s8 + $0x68] sm:$0xff] %vm946_vm2, %v986_v40  ;;  %1003 = vst.msk [vmem:[%s3000_s8 + $0x38] sm:$0xff] %vm946_vm2, %v983_v54 }
 0x419   :  { %v915_v16 = vpop.permute.xlu0 %914  ;;  %v909_v3 = vpop.permute.xlu1 %908 }
 0x41a   :  { %v988_v24 = vsel %vm192_vm0, %v2826_v21, %v915_v16  ;;  %v985_v22 = vsel %vm192_vm0, %v2742_v50, %v909_v3 }
 0x41b   :  { %1013 = vst.msk [vmem:[%s3000_s8 + $0x88] sm:$0xff] %vm946_vm2, %v988_v24  ;;  %1007 = vst.msk [vmem:[%s3000_s8 + $0x58] sm:$0xff] %vm946_vm2, %v985_v22 }
 0x41d   :  { %v919_v58 = vpop.permute.xlu0 %918  ;;  %v913_v15 = vpop.permute.xlu1 %912 }
 0x41e   :  { %v990_v18 = vsel %vm192_vm0, %v2836_v41, %v919_v58  ;;  %v987_v21 = vsel %vm192_vm0, %v2841_v51, %v913_v15 }
 0x41f   :  { %1017 = vst.msk [vmem:[%s3000_s8 + $0xa8] sm:$0xff] %vm946_vm2, %v990_v18  ;;  %1011 = vst.msk [vmem:[%s3000_s8 + $0x78] sm:$0xff] %vm946_vm2, %v987_v21 }
 0x421   :  { %v923_v50 = vpop.permute.xlu0 %922  ;;  %v917_v20 = vpop.permute.xlu1 %916 }
 0x422   :  { %v992_v36 = vsel %vm192_vm0, %v2856_v29, %v923_v50  ;;  %v989_v27 = vsel %vm192_vm0, %v853_v9, %v917_v20 }
 0x423   :  { %1021 = vst.msk [vmem:[%s3000_s8 + $0xc8] sm:$0xff] %vm946_vm2, %v992_v36  ;;  %1015 = vst.msk [vmem:[%s3000_s8 + $0x98] sm:$0xff] %vm946_vm2, %v989_v27 }
 0x425   :  { %v927_v48 = vpop.permute.xlu0 %926  ;;  %v921_v33 = vpop.permute.xlu1 %920 }
 0x426   :  { %v994_v55 = vsel %vm192_vm0, %v863_v19, %v927_v48  ;;  %v991_v41 = vsel %vm192_vm0, %v857_v5, %v921_v33 }
 0x427   :  { %1025 = vst.msk [vmem:[%s3000_s8 + $0xe8] sm:$0xff] %vm946_vm2, %v994_v55  ;;  %1019 = vst.msk [vmem:[%s3000_s8 + $0xb8] sm:$0xff] %vm946_vm2, %v991_v41 }
 0x429   :  { %v925_v28 = vpop.permute.xlu1 %924 }
 0x42a   :  { %v993_v0 = vsel %vm192_vm0, %v861_v35, %v925_v28 }
 0x42b   :  { %1023 = vst.msk [vmem:[%s3000_s8 + $0xd8] sm:$0xff] %vm946_vm2, %v993_v0 }
 0x42d   :  { %v929_v51 = vpop.permute.xlu1 %928 }
 0x42e   :  { %v995_v47 = vsel %vm192_vm0, %v865_v53, %v929_v51 }
 0x42f   :  { %1027 = vst.msk [vmem:[%s3000_s8 + $0xf8] sm:$0xff] %vm946_vm2, %v995_v47 }
 0x437   :  { %s1573_s4 = spop %1572 }
 0x438   :  { %v1428_v63 = vstv %s1573_s4 }
 0x439   :  { %s1575_s10 = spop %1574 }
 0x43a   :  { %v1451_v4 = vstv %s1575_s10 }
 0x43b   :  { %v1452_v32 = vadd.f32 %v1451_v4, %v1428_v63 }
 0x43d   :  { %v1453_v43 = vmul.f32 0.5, %v1452_v32 }
 0x43f   :  { %v1455_v23 = vmul.f32 0.00027901787, %v1453_v43 }
 0x441   :  { %1457 = vst.msk [vmem:[#allocation2] sm:$0x1] %vm1456_vm4, %v1455_v23 }
 0x442   :  { %1746 = shalt.err (!%p1743_p4)
}
 0x443   :  { %1469 = dma.vmem_to_hbm [thread:$0]  %s1467_s11, 16, %s3001_s9, [#allocation3]  }
 0x444   :  { %1755 = dma.done.wait [#allocation3], 16  }
 0x445   :  { %1756 = vsyncadd [#allocation3], 4294967280 }
 0x446   :  { %1475 = vsyncpa [#allocation3], 1 }

</bundles_post_ra>
